<compile_context>
chip_gen: v6e
topology: v6e:2x2x1
jax: 0.10.0
libtpu: 0.0.40
codegen_flags: <defaults>
</compile_context>

<pallas_src>
import jax
import jax.numpy as jnp
from jax import lax
from jax.experimental import pallas as pl
from jax.experimental.pallas import tpu as pltpu


def _round_up(x, m):
    return ((x + m - 1) // m) * m


def lstm_chunk_kernel(len_ref, x_ref, wih_ref, whh_ref, b_ref, h_out_ref,
                      gx_scr, h_scr, c_scr):
    """One (batch_block, time_chunk) grid step of the LSTM recurrence.

    len_ref   : (BB, 1)        int32  sequence lengths (0 for padded rows)
    x_ref     : (TC, BB, Ep)   bf16   zero-padded embedding chunk
    wih_ref   : (Ep, 4*Hp)     bf16   gate-padded input weights
    whh_ref   : (Hp, 4*Hp)     bf16   gate-padded recurrent weights
    b_ref     : (1, 4*Hp)      f32    fused bias (b_ih + b_hh), gate-padded
    h_out_ref : (BB, Hp)       f32    final hidden state (lane-dense)
    gx_scr    : (TC, BB, 4*Hp) f32    chunk-wide precomputed x-projection
    h_scr/c_scr: (BB, Hp)      f32    recurrent state carried across chunks
    """
    t_chunk = pl.program_id(1)
    TC, BB, Ep = x_ref.shape
    Hp = h_out_ref.shape[1]

    @pl.when(t_chunk == 0)
    def _():
        h_scr[...] = jnp.zeros_like(h_scr)
        c_scr[...] = jnp.zeros_like(c_scr)

    # Chunk-wide input projection: one MXU matmul with TC*BB rows of occupancy,
    # bias folded in here (hoisted out of the serial loop).
    x_flat = x_ref[...].reshape(TC * BB, Ep)
    gx = jnp.dot(x_flat, wih_ref[...], preferred_element_type=jnp.float32)
    gx_scr[...] = (gx + b_ref[...]).reshape(TC, BB, 4 * Hp)

    lens = len_ref[...]                       # (BB, 1) int32, loaded once
    whh = whh_ref[...]                        # (Hp, 4Hp) bf16, loaded once
    t0 = t_chunk * TC

    def step(tl, carry):
        h, c = carry                                          # (BB, Hp) f32
        # Serial critical path: only the recurrent matmul (K = Hp) + gate math.
        gates = gx_scr[tl] + jnp.dot(h.astype(jnp.bfloat16), whh,
                                     preferred_element_type=jnp.float32)
        i_g = jax.nn.sigmoid(gates[:, 0 * Hp:1 * Hp])
        f_g = jax.nn.sigmoid(gates[:, 1 * Hp:2 * Hp])
        g_g = jnp.tanh(gates[:, 2 * Hp:3 * Hp])
        o_g = jax.nn.sigmoid(gates[:, 3 * Hp:4 * Hp])
        c_new = f_g * c + i_g * g_g
        h_new = o_g * jnp.tanh(c_new)
        # Packed-sequence semantics: freeze state once t >= length[b].
        valid = (t0 + tl) < lens                              # (BB, 1) bool
        return (jnp.where(valid, h_new, h), jnp.where(valid, c_new, c))

    # Bounded unroll (TC steps) per chunk; full-T unroll is avoided.
    h_f, c_f = lax.fori_loop(0, TC, step, (h_scr[...], c_scr[...]), unroll=True)
    h_scr[...] = h_f
    c_scr[...] = c_f
    h_out_ref[...] = h_f    # output block is resident; writeback at block change


@jax.jit
def lstm_model_forward(text_sequence, text_lengths, params):
    """Equivalent of LSTMModel.forward: returns fc(hidden) of shape (1, B, O)."""
    emb_table = params["embedding"]                 # (V, E), pad row is zero
    emb = emb_table[text_sequence]                  # (T, B, E) gather (XLA glue)

    T, B, E = emb.shape
    H = params["w_hh"].shape[0]                     # w_hh stored as (H, 4H)
    O = params["w_fc"].shape[1]

    TC = 8                                          # time-chunk size
    BB = 8                                          # batch rows per block (>= 8 sublanes)
    Bp = _round_up(max(B, BB), BB)
    Ep = _round_up(E, 128)                          # lane-align embedding slice
    Hp = _round_up(H, 128)                          # lane-align each gate slice
    Tp = _round_up(T, TC)

    # ---- gate-padded weights / bias (built once; bf16 for the MXU) -----------
    w_ih, w_hh = params["w_ih"], params["w_hh"]     # (E, 4H), (H, 4H)
    b_sum = params["b_ih"] + params["b_hh"]         # (4H,)
    w_ih_p = jnp.zeros((Ep, 4 * Hp), jnp.float32)
    w_hh_p = jnp.zeros((Hp, 4 * Hp), jnp.float32)
    b_p = jnp.zeros((1, 4 * Hp), jnp.float32)
    for g in range(4):                              # gate order [i, f, g, o]
        w_ih_p = w_ih_p.at[:E, g * Hp:g * Hp + H].set(w_ih[:, g * H:(g + 1) * H])
        w_hh_p = w_hh_p.at[:H, g * Hp:g * Hp + H].set(w_hh[:, g * H:(g + 1) * H])
        b_p = b_p.at[0, g * Hp:g * Hp + H].set(b_sum[g * H:(g + 1) * H])
    w_ih_p = w_ih_p.astype(jnp.bfloat16)
    w_hh_p = w_hh_p.astype(jnp.bfloat16)

    # ---- padded activations / lengths ----------------------------------------
    emb_p = jnp.zeros((Tp, Bp, Ep), jnp.bfloat16).at[:T, :B, :E].set(
        emb.astype(jnp.bfloat16))
    len_p = jnp.zeros((Bp, 1), jnp.int32).at[:B, 0].set(
        text_lengths.astype(jnp.int32))

    grid = (Bp // BB, Tp // TC)

    cost = pl.CostEstimate(
        flops=2 * Tp * Bp * (Ep + Hp) * 4 * Hp,
        transcendentals=5 * Tp * Bp * Hp,
        bytes_accessed=(Tp * Bp * Ep * 2 + Bp * 4
                        + (Ep + Hp) * 4 * Hp * 2 + 4 * Hp * 4 + Bp * Hp * 4),
    )

    h_final = pl.pallas_call(
        lstm_chunk_kernel,
        out_shape=jax.ShapeDtypeStruct((Bp, Hp), jnp.float32),
        grid_spec=pltpu.PrefetchScalarGridSpec(
            num_scalar_prefetch=0,
            grid=grid,
            in_specs=[
                pl.BlockSpec((BB, 1), lambda b, t: (b, 0)),          # lengths
                pl.BlockSpec((TC, BB, Ep), lambda b, t: (t, b, 0)),  # emb chunk (streamed)
                pl.BlockSpec((Ep, 4 * Hp), lambda b, t: (0, 0)),     # W_ih (resident)
                pl.BlockSpec((Hp, 4 * Hp), lambda b, t: (0, 0)),     # W_hh (resident)
                pl.BlockSpec((1, 4 * Hp), lambda b, t: (0, 0)),      # fused bias
            ],
            out_specs=pl.BlockSpec((BB, Hp), lambda b, t: (b, 0)),
            scratch_shapes=[
                pltpu.VMEM((TC, BB, 4 * Hp), jnp.float32),   # chunk x-projection
                pltpu.VMEM((BB, Hp), jnp.float32),           # h carry
                pltpu.VMEM((BB, Hp), jnp.float32),           # c carry
            ],
        ),
        compiler_params=pltpu.CompilerParams(
            # batch blocks are independent (v7x 2-TC sharding); time is serial.
            dimension_semantics=("parallel", "arbitrary"),
            vmem_limit_bytes=16 * 1024 * 1024,
        ),
        cost_estimate=cost,
    )(len_p, emb_p, w_ih_p, w_hh_p, b_p)

    # Final FC in XLA on the real rows/lanes (O=2 would waste MXU/vst lanes in-kernel).
    h = h_final[:B, :H]
    out = h @ params["w_fc"] + params["b_fc"]       # (B, O)
    return out.reshape(1, B, O)                     # matches fc(hidden) shape


def reference_forward(text_sequence, text_lengths, params):
    """Pure-JAX reference with the same numerics (bf16 MXU inputs, f32 accumulate)."""
    emb = params["embedding"][text_sequence]        # (T, B, E)
    T, B, E = emb.shape
    H = params["w_hh"].shape[0]
    w_ih = params["w_ih"].astype(jnp.bfloat16)
    w_hh = params["w_hh"].astype(jnp.bfloat16)
    bias = params["b_ih"] + params["b_hh"]

    def step(carry, inp):
        h, c = carry
        x_t, t = inp
        gates = (jnp.dot(x_t.astype(jnp.bfloat16), w_ih,
                         preferred_element_type=jnp.float32)
                 + jnp.dot(h.astype(jnp.bfloat16), w_hh,
                           preferred_element_type=jnp.float32)
                 + bias)
        i = jax.nn.sigmoid(gates[:, 0 * H:1 * H])
        f = jax.nn.sigmoid(gates[:, 1 * H:2 * H])
        g = jnp.tanh(gates[:, 2 * H:3 * H])
        o = jax.nn.sigmoid(gates[:, 3 * H:4 * H])
        c_new = f * c + i * g
        h_new = o * jnp.tanh(c_new)
        valid = (t < text_lengths.astype(jnp.int32))[:, None]
        h = jnp.where(valid, h_new, h)
        c = jnp.where(valid, c_new, c)
        return (h, c), None

    h0 = jnp.zeros((B, H), jnp.float32)
    c0 = jnp.zeros((B, H), jnp.float32)
    (h, _), _ = jax.lax.scan(step, (h0, c0), (emb, jnp.arange(T, dtype=jnp.int32)))
    return (h @ params["w_fc"] + params["b_fc"]).reshape(1, B, -1)


def init_params(key, vocab_size, embedding_size, hidden_size, output_size, pad_idx):
    ks = jax.random.split(key, 8)
    lim = 1.0 / jnp.sqrt(hidden_size)
    emb = jax.random.normal(ks[0], (vocab_size, embedding_size), jnp.float32)
    emb = emb.at[pad_idx].set(0.0)                  # padding_idx => zero row
    params = {
        "embedding": emb,
        # stored transposed relative to PyTorch: (E, 4H), (H, 4H); gate order [i,f,g,o]
        "w_ih": jax.random.uniform(ks[1], (embedding_size, 4 * hidden_size),
                                   jnp.float32, -lim, lim),
        "w_hh": jax.random.uniform(ks[2], (hidden_size, 4 * hidden_size),
                                   jnp.float32, -lim, lim),
        "b_ih": jax.random.uniform(ks[3], (4 * hidden_size,), jnp.float32, -lim, lim),
        "b_hh": jax.random.uniform(ks[4], (4 * hidden_size,), jnp.float32, -lim, lim),
        "w_fc": jax.random.uniform(ks[5], (hidden_size, output_size),
                                   jnp.float32, -lim, lim),
        "b_fc": jax.random.uniform(ks[6], (output_size,), jnp.float32, -lim, lim),
    }
    return params


if __name__ == "__main__":
    VOCAB, EMB, HID, OUT, PAD = 50, 16, 32, 2, 0
    SEQ, BATCH = 16, 2     # SEQ > time-chunk so the pipelined time grid (2 chunks) is exercised

    key = jax.random.PRNGKey(0)
    k_param, k_tok = jax.random.split(key)
    params = init_params(k_param, VOCAB, EMB, HID, OUT, PAD)

    # (seq_len, batch) token ids; lengths sorted descending as pack_padded expects.
    text_sequence = jax.random.randint(k_tok, (SEQ, BATCH), 1, VOCAB, jnp.int32)
    text_lengths = jnp.array([SEQ, 11], dtype=jnp.int32)
    # zero out padded positions (as a packed input would have been)
    t_idx = jnp.arange(SEQ, dtype=jnp.int32)[:, None]
    text_sequence = jnp.where(t_idx < text_lengths[None, :], text_sequence, PAD)

    out = lstm_model_forward(text_sequence, text_lengths, params)
    out = jax.block_until_ready(out)

    ref = reference_forward(text_sequence, text_lengths, params)
    assert out.shape == (1, BATCH, OUT)
    assert jnp.allclose(out, ref, atol=1e-3, rtol=1e-3), (out, ref)
    print("KERNEL_OK")
</pallas_src>

<mosaic_0001>
module attributes {stable_mosaic.version = 11 : i64} {
  func.func @lstm_chunk_kernel(%arg0: i32, %arg1: i32, %arg2: memref<8x1xi32, #tpu.memory_space<vmem>>, %arg3: memref<8x8x128xbf16, #tpu.memory_space<vmem>>, %arg4: memref<128x512xbf16, #tpu.memory_space<vmem>>, %arg5: memref<128x512xbf16, #tpu.memory_space<vmem>>, %arg6: memref<1x512xf32, #tpu.memory_space<vmem>>, %arg7: memref<8x128xf32, #tpu.memory_space<vmem>>, %arg8: memref<8x8x512xf32, #tpu.memory_space<vmem>>, %arg9: memref<8x128xf32, #tpu.memory_space<vmem>>, %arg10: memref<8x128xf32, #tpu.memory_space<vmem>>) attributes {dimension_semantics = [#tpu.dimension_semantics<parallel>, #tpu.dimension_semantics<arbitrary>], iteration_bounds = array<i64: 1, 2>, scalar_prefetch = 0 : i64, scratch_operands = 3 : i64, tpu.core_type = #tpu.core_type<tc>, window_params = [{transform_indices = @transform_0, window_bounds = array<i64: 8, 1>}, {transform_indices = @transform_1, window_bounds = array<i64: 8, 8, 128>}, {pipeline_mode = #tpu.pipeline_mode<synchronous>, transform_indices = @transform_2, window_bounds = array<i64: 128, 512>}, {pipeline_mode = #tpu.pipeline_mode<synchronous>, transform_indices = @transform_3, window_bounds = array<i64: 128, 512>}, {pipeline_mode = #tpu.pipeline_mode<synchronous>, transform_indices = @transform_4, window_bounds = array<i64: 1, 512>}, {transform_indices = @transform_5, window_bounds = array<i64: 8, 128>}]} {
    %c0_i32 = arith.constant 0 : i32
    %0 = arith.cmpi eq, %arg1, %c0_i32 : i32
    %1 = arith.extui %0 : i1 to i32
    %c0_i32_0 = arith.constant 0 : i32
    %2 = arith.cmpi ne, %1, %c0_i32_0 : i32
    scf.if %2 {
      %cst_74 = arith.constant 0.000000e+00 : f32
      %340 = vector.broadcast %cst_74 : f32 to vector<8x128xf32>
      %c0_75 = arith.constant 0 : index
      %c0_76 = arith.constant 0 : index
      %341 = vector.load %arg9[%c0_75, %c0_76] : memref<8x128xf32, #tpu.memory_space<vmem>>, vector<8x128xf32>
      tpu.vector_store %arg9[%c0_75, %c0_76], %340 {strides = array<i32>} : memref<8x128xf32, #tpu.memory_space<vmem>>, vector<8x128xf32>,
      %cst_77 = arith.constant 0.000000e+00 : f32
      %342 = vector.broadcast %cst_77 : f32 to vector<8x128xf32>
      %c0_78 = arith.constant 0 : index
      %c0_79 = arith.constant 0 : index
      %343 = vector.load %arg10[%c0_78, %c0_79] : memref<8x128xf32, #tpu.memory_space<vmem>>, vector<8x128xf32>
      tpu.vector_store %arg10[%c0_78, %c0_79], %342 {strides = array<i32>} : memref<8x128xf32, #tpu.memory_space<vmem>>, vector<8x128xf32>,
    } else {
    }
    %c0 = arith.constant 0 : index
    %c0_1 = arith.constant 0 : index
    %c0_2 = arith.constant 0 : index
    %3 = vector.load %arg3[%c0, %c0_1, %c0_2] : memref<8x8x128xbf16, #tpu.memory_space<vmem>>, vector<8x8x128xbf16>
    %4 = vector.shape_cast %3 : vector<8x8x128xbf16> to vector<64x128xbf16>
    %c0_3 = arith.constant 0 : index
    %c0_4 = arith.constant 0 : index
    %5 = vector.load %arg4[%c0_3, %c0_4] : memref<128x512xbf16, #tpu.memory_space<vmem>>, vector<128x512xbf16>
    %cst = arith.constant dense<0.000000e+00> : vector<64x512xf32>
    %6 = tpu.matmul %4, %5, %cst {dimension_numbers = #tpu.dot_dimension_numbers<[1], [0], [0], [1], [0, 0, 1, 1], [], []>} : vector<64x128xbf16>, vector<128x512xbf16>, vector<64x512xf32> -> vector<64x512xf32>
    %c0_5 = arith.constant 0 : index
    %c0_6 = arith.constant 0 : index
    %7 = vector.load %arg6[%c0_5, %c0_6] : memref<1x512xf32, #tpu.memory_space<vmem>>, vector<1x512xf32>
    %8 = vector.broadcast %7 : vector<1x512xf32> to vector<64x512xf32>
    %9 = arith.addf %6, %8 : vector<64x512xf32>
    %10 = vector.shape_cast %9 : vector<64x512xf32> to vector<8x8x512xf32>
    %c0_7 = arith.constant 0 : index
    %c0_8 = arith.constant 0 : index
    %c0_9 = arith.constant 0 : index
    %11 = vector.load %arg8[%c0_7, %c0_8, %c0_9] : memref<8x8x512xf32, #tpu.memory_space<vmem>>, vector<8x8x512xf32>
    tpu.vector_store %arg8[%c0_7, %c0_8, %c0_9], %10 {strides = array<i32>} : memref<8x8x512xf32, #tpu.memory_space<vmem>>, vector<8x8x512xf32>,
    %c0_10 = arith.constant 0 : index
    %c0_11 = arith.constant 0 : index
    %12 = vector.load %arg2[%c0_10, %c0_11] : memref<8x1xi32, #tpu.memory_space<vmem>>, vector<8x1xi32>
    %c0_12 = arith.constant 0 : index
    %c0_13 = arith.constant 0 : index
    %13 = vector.load %arg5[%c0_12, %c0_13] : memref<128x512xbf16, #tpu.memory_space<vmem>>, vector<128x512xbf16>
    %c8_i32 = arith.constant 8 : i32
    %14 = arith.muli %arg1, %c8_i32 : i32
    %c0_14 = arith.constant 0 : index
    %c0_15 = arith.constant 0 : index
    %15 = vector.load %arg9[%c0_14, %c0_15] : memref<8x128xf32, #tpu.memory_space<vmem>>, vector<8x128xf32>
    %c0_16 = arith.constant 0 : index
    %c0_17 = arith.constant 0 : index
    %16 = vector.load %arg10[%c0_16, %c0_17] : memref<8x128xf32, #tpu.memory_space<vmem>>, vector<8x128xf32>
    %c0_i32_18 = arith.constant 0 : i32
    %17 = arith.index_cast %c0_i32_18 : i32 to index
    %c0_19 = arith.constant 0 : index
    %c0_20 = arith.constant 0 : index
    %18 = vector.load %arg8[%17, %c0_19, %c0_20] : memref<8x8x512xf32, #tpu.memory_space<vmem>>, vector<1x8x512xf32>
    %19 = vector.shape_cast %18 : vector<1x8x512xf32> to vector<8x512xf32>
    %20 = arith.truncf %15 : vector<8x128xf32> to vector<8x128xbf16>
    %cst_21 = arith.constant dense<0.000000e+00> : vector<8x512xf32>
    %21 = tpu.matmul %20, %13, %cst_21 {dimension_numbers = #tpu.dot_dimension_numbers<[1], [0], [0], [1], [0, 0, 1, 1], [], []>} : vector<8x128xbf16>, vector<128x512xbf16>, vector<8x512xf32> -> vector<8x512xf32>
    %22 = arith.addf %19, %21 : vector<8x512xf32>
    %23 = vector.extract_strided_slice %22 {offsets = [0, 0], sizes = [8, 128], strides = [1, 1]} : vector<8x512xf32> to vector<8x128xf32>
    %24 = arith.negf %23 : vector<8x128xf32>
    %25 = math.exp %24 : vector<8x128xf32>
    %cst_22 = arith.constant 1.000000e+00 : f32
    %26 = vector.broadcast %cst_22 : f32 to vector<8x128xf32>
    %27 = arith.addf %26, %25 : vector<8x128xf32>
    %28 = arith.divf %26, %27 : vector<8x128xf32>
    %29 = vector.extract_strided_slice %22 {offsets = [0, 128], sizes = [8, 128], strides = [1, 1]} : vector<8x512xf32> to vector<8x128xf32>
    %30 = arith.negf %29 : vector<8x128xf32>
    %31 = math.exp %30 : vector<8x128xf32>
    %cst_23 = arith.constant 1.000000e+00 : f32
    %32 = vector.broadcast %cst_23 : f32 to vector<8x128xf32>
    %33 = arith.addf %32, %31 : vector<8x128xf32>
    %34 = arith.divf %32, %33 : vector<8x128xf32>
    %35 = vector.extract_strided_slice %22 {offsets = [0, 256], sizes = [8, 128], strides = [1, 1]} : vector<8x512xf32> to vector<8x128xf32>
    %36 = math.tanh %35 : vector<8x128xf32>
    %37 = vector.extract_strided_slice %22 {offsets = [0, 384], sizes = [8, 128], strides = [1, 1]} : vector<8x512xf32> to vector<8x128xf32>
    %38 = arith.negf %37 : vector<8x128xf32>
    %39 = math.exp %38 : vector<8x128xf32>
    %cst_24 = arith.constant 1.000000e+00 : f32
    %40 = vector.broadcast %cst_24 : f32 to vector<8x128xf32>
    %41 = arith.addf %40, %39 : vector<8x128xf32>
    %42 = arith.divf %40, %41 : vector<8x128xf32>
    %43 = arith.mulf %34, %16 : vector<8x128xf32>
    %44 = arith.mulf %28, %36 : vector<8x128xf32>
    %45 = arith.addf %43, %44 : vector<8x128xf32>
    %46 = math.tanh %45 : vector<8x128xf32>
    %47 = arith.mulf %42, %46 : vector<8x128xf32>
    %48 = arith.addi %14, %c0_i32_18 : i32
    %49 = vector.broadcast %48 : i32 to vector<8x1xi32>
    %50 = arith.cmpi slt, %49, %12 : vector<8x1xi32>
    %51 = vector.shape_cast %50 : vector<8x1xi1> to vector<8x1xi1>
    %52 = vector.broadcast %51 : vector<8x1xi1> to vector<8x128xi1>
    %53 = arith.select %52, %47, %15 : vector<8x128xi1>, vector<8x128xf32>
    %54 = vector.shape_cast %50 : vector<8x1xi1> to vector<8x1xi1>
    %55 = vector.broadcast %54 : vector<8x1xi1> to vector<8x128xi1>
    %56 = arith.select %55, %45, %16 : vector<8x128xi1>, vector<8x128xf32>
    %c1_i32 = arith.constant 1 : i32
    %57 = arith.index_cast %c1_i32 : i32 to index
    %c0_25 = arith.constant 0 : index
    %c0_26 = arith.constant 0 : index
    %58 = vector.load %arg8[%57, %c0_25, %c0_26] : memref<8x8x512xf32, #tpu.memory_space<vmem>>, vector<1x8x512xf32>
    %59 = vector.shape_cast %58 : vector<1x8x512xf32> to vector<8x512xf32>
    %60 = arith.truncf %53 : vector<8x128xf32> to vector<8x128xbf16>
    %cst_27 = arith.constant dense<0.000000e+00> : vector<8x512xf32>
    %61 = tpu.matmul %60, %13, %cst_27 {dimension_numbers = #tpu.dot_dimension_numbers<[1], [0], [0], [1], [0, 0, 1, 1], [], []>} : vector<8x128xbf16>, vector<128x512xbf16>, vector<8x512xf32> -> vector<8x512xf32>
    %62 = arith.addf %59, %61 : vector<8x512xf32>
    %63 = vector.extract_strided_slice %62 {offsets = [0, 0], sizes = [8, 128], strides = [1, 1]} : vector<8x512xf32> to vector<8x128xf32>
    %64 = arith.negf %63 : vector<8x128xf32>
    %65 = math.exp %64 : vector<8x128xf32>
    %cst_28 = arith.constant 1.000000e+00 : f32
    %66 = vector.broadcast %cst_28 : f32 to vector<8x128xf32>
    %67 = arith.addf %66, %65 : vector<8x128xf32>
    %68 = arith.divf %66, %67 : vector<8x128xf32>
    %69 = vector.extract_strided_slice %62 {offsets = [0, 128], sizes = [8, 128], strides = [1, 1]} : vector<8x512xf32> to vector<8x128xf32>
    %70 = arith.negf %69 : vector<8x128xf32>
    %71 = math.exp %70 : vector<8x128xf32>
    %cst_29 = arith.constant 1.000000e+00 : f32
    %72 = vector.broadcast %cst_29 : f32 to vector<8x128xf32>
    %73 = arith.addf %72, %71 : vector<8x128xf32>
    %74 = arith.divf %72, %73 : vector<8x128xf32>
    %75 = vector.extract_strided_slice %62 {offsets = [0, 256], sizes = [8, 128], strides = [1, 1]} : vector<8x512xf32> to vector<8x128xf32>
    %76 = math.tanh %75 : vector<8x128xf32>
    %77 = vector.extract_strided_slice %62 {offsets = [0, 384], sizes = [8, 128], strides = [1, 1]} : vector<8x512xf32> to vector<8x128xf32>
    %78 = arith.negf %77 : vector<8x128xf32>
    %79 = math.exp %78 : vector<8x128xf32>
    %cst_30 = arith.constant 1.000000e+00 : f32
    %80 = vector.broadcast %cst_30 : f32 to vector<8x128xf32>
    %81 = arith.addf %80, %79 : vector<8x128xf32>
    %82 = arith.divf %80, %81 : vector<8x128xf32>
    %83 = arith.mulf %74, %56 : vector<8x128xf32>
    %84 = arith.mulf %68, %76 : vector<8x128xf32>
    %85 = arith.addf %83, %84 : vector<8x128xf32>
    %86 = math.tanh %85 : vector<8x128xf32>
    %87 = arith.mulf %82, %86 : vector<8x128xf32>
    %88 = arith.addi %14, %c1_i32 : i32
    %89 = vector.broadcast %88 : i32 to vector<8x1xi32>
    %90 = arith.cmpi slt, %89, %12 : vector<8x1xi32>
    %91 = vector.shape_cast %90 : vector<8x1xi1> to vector<8x1xi1>
    %92 = vector.broadcast %91 : vector<8x1xi1> to vector<8x128xi1>
    %93 = arith.select %92, %87, %53 : vector<8x128xi1>, vector<8x128xf32>
    %94 = vector.shape_cast %90 : vector<8x1xi1> to vector<8x1xi1>
    %95 = vector.broadcast %94 : vector<8x1xi1> to vector<8x128xi1>
    %96 = arith.select %95, %85, %56 : vector<8x128xi1>, vector<8x128xf32>
    %c2_i32 = arith.constant 2 : i32
    %97 = arith.index_cast %c2_i32 : i32 to index
    %c0_31 = arith.constant 0 : index
    %c0_32 = arith.constant 0 : index
    %98 = vector.load %arg8[%97, %c0_31, %c0_32] : memref<8x8x512xf32, #tpu.memory_space<vmem>>, vector<1x8x512xf32>
    %99 = vector.shape_cast %98 : vector<1x8x512xf32> to vector<8x512xf32>
    %100 = arith.truncf %93 : vector<8x128xf32> to vector<8x128xbf16>
    %cst_33 = arith.constant dense<0.000000e+00> : vector<8x512xf32>
    %101 = tpu.matmul %100, %13, %cst_33 {dimension_numbers = #tpu.dot_dimension_numbers<[1], [0], [0], [1], [0, 0, 1, 1], [], []>} : vector<8x128xbf16>, vector<128x512xbf16>, vector<8x512xf32> -> vector<8x512xf32>
    %102 = arith.addf %99, %101 : vector<8x512xf32>
    %103 = vector.extract_strided_slice %102 {offsets = [0, 0], sizes = [8, 128], strides = [1, 1]} : vector<8x512xf32> to vector<8x128xf32>
    %104 = arith.negf %103 : vector<8x128xf32>
    %105 = math.exp %104 : vector<8x128xf32>
    %cst_34 = arith.constant 1.000000e+00 : f32
    %106 = vector.broadcast %cst_34 : f32 to vector<8x128xf32>
    %107 = arith.addf %106, %105 : vector<8x128xf32>
    %108 = arith.divf %106, %107 : vector<8x128xf32>
    %109 = vector.extract_strided_slice %102 {offsets = [0, 128], sizes = [8, 128], strides = [1, 1]} : vector<8x512xf32> to vector<8x128xf32>
    %110 = arith.negf %109 : vector<8x128xf32>
    %111 = math.exp %110 : vector<8x128xf32>
    %cst_35 = arith.constant 1.000000e+00 : f32
    %112 = vector.broadcast %cst_35 : f32 to vector<8x128xf32>
    %113 = arith.addf %112, %111 : vector<8x128xf32>
    %114 = arith.divf %112, %113 : vector<8x128xf32>
    %115 = vector.extract_strided_slice %102 {offsets = [0, 256], sizes = [8, 128], strides = [1, 1]} : vector<8x512xf32> to vector<8x128xf32>
    %116 = math.tanh %115 : vector<8x128xf32>
    %117 = vector.extract_strided_slice %102 {offsets = [0, 384], sizes = [8, 128], strides = [1, 1]} : vector<8x512xf32> to vector<8x128xf32>
    %118 = arith.negf %117 : vector<8x128xf32>
    %119 = math.exp %118 : vector<8x128xf32>
    %cst_36 = arith.constant 1.000000e+00 : f32
    %120 = vector.broadcast %cst_36 : f32 to vector<8x128xf32>
    %121 = arith.addf %120, %119 : vector<8x128xf32>
    %122 = arith.divf %120, %121 : vector<8x128xf32>
    %123 = arith.mulf %114, %96 : vector<8x128xf32>
    %124 = arith.mulf %108, %116 : vector<8x128xf32>
    %125 = arith.addf %123, %124 : vector<8x128xf32>
    %126 = math.tanh %125 : vector<8x128xf32>
    %127 = arith.mulf %122, %126 : vector<8x128xf32>
    %128 = arith.addi %14, %c2_i32 : i32
    %129 = vector.broadcast %128 : i32 to vector<8x1xi32>
    %130 = arith.cmpi slt, %129, %12 : vector<8x1xi32>
    %131 = vector.shape_cast %130 : vector<8x1xi1> to vector<8x1xi1>
    %132 = vector.broadcast %131 : vector<8x1xi1> to vector<8x128xi1>
    %133 = arith.select %132, %127, %93 : vector<8x128xi1>, vector<8x128xf32>
    %134 = vector.shape_cast %130 : vector<8x1xi1> to vector<8x1xi1>
    %135 = vector.broadcast %134 : vector<8x1xi1> to vector<8x128xi1>
    %136 = arith.select %135, %125, %96 : vector<8x128xi1>, vector<8x128xf32>
    %c3_i32 = arith.constant 3 : i32
    %137 = arith.index_cast %c3_i32 : i32 to index
    %c0_37 = arith.constant 0 : index
    %c0_38 = arith.constant 0 : index
    %138 = vector.load %arg8[%137, %c0_37, %c0_38] : memref<8x8x512xf32, #tpu.memory_space<vmem>>, vector<1x8x512xf32>
    %139 = vector.shape_cast %138 : vector<1x8x512xf32> to vector<8x512xf32>
    %140 = arith.truncf %133 : vector<8x128xf32> to vector<8x128xbf16>
    %cst_39 = arith.constant dense<0.000000e+00> : vector<8x512xf32>
    %141 = tpu.matmul %140, %13, %cst_39 {dimension_numbers = #tpu.dot_dimension_numbers<[1], [0], [0], [1], [0, 0, 1, 1], [], []>} : vector<8x128xbf16>, vector<128x512xbf16>, vector<8x512xf32> -> vector<8x512xf32>
    %142 = arith.addf %139, %141 : vector<8x512xf32>
    %143 = vector.extract_strided_slice %142 {offsets = [0, 0], sizes = [8, 128], strides = [1, 1]} : vector<8x512xf32> to vector<8x128xf32>
    %144 = arith.negf %143 : vector<8x128xf32>
    %145 = math.exp %144 : vector<8x128xf32>
    %cst_40 = arith.constant 1.000000e+00 : f32
    %146 = vector.broadcast %cst_40 : f32 to vector<8x128xf32>
    %147 = arith.addf %146, %145 : vector<8x128xf32>
    %148 = arith.divf %146, %147 : vector<8x128xf32>
    %149 = vector.extract_strided_slice %142 {offsets = [0, 128], sizes = [8, 128], strides = [1, 1]} : vector<8x512xf32> to vector<8x128xf32>
    %150 = arith.negf %149 : vector<8x128xf32>
    %151 = math.exp %150 : vector<8x128xf32>
    %cst_41 = arith.constant 1.000000e+00 : f32
    %152 = vector.broadcast %cst_41 : f32 to vector<8x128xf32>
    %153 = arith.addf %152, %151 : vector<8x128xf32>
    %154 = arith.divf %152, %153 : vector<8x128xf32>
    %155 = vector.extract_strided_slice %142 {offsets = [0, 256], sizes = [8, 128], strides = [1, 1]} : vector<8x512xf32> to vector<8x128xf32>
    %156 = math.tanh %155 : vector<8x128xf32>
    %157 = vector.extract_strided_slice %142 {offsets = [0, 384], sizes = [8, 128], strides = [1, 1]} : vector<8x512xf32> to vector<8x128xf32>
    %158 = arith.negf %157 : vector<8x128xf32>
    %159 = math.exp %158 : vector<8x128xf32>
    %cst_42 = arith.constant 1.000000e+00 : f32
    %160 = vector.broadcast %cst_42 : f32 to vector<8x128xf32>
    %161 = arith.addf %160, %159 : vector<8x128xf32>
    %162 = arith.divf %160, %161 : vector<8x128xf32>
    %163 = arith.mulf %154, %136 : vector<8x128xf32>
    %164 = arith.mulf %148, %156 : vector<8x128xf32>
    %165 = arith.addf %163, %164 : vector<8x128xf32>
    %166 = math.tanh %165 : vector<8x128xf32>
    %167 = arith.mulf %162, %166 : vector<8x128xf32>
    %168 = arith.addi %14, %c3_i32 : i32
    %169 = vector.broadcast %168 : i32 to vector<8x1xi32>
    %170 = arith.cmpi slt, %169, %12 : vector<8x1xi32>
    %171 = vector.shape_cast %170 : vector<8x1xi1> to vector<8x1xi1>
    %172 = vector.broadcast %171 : vector<8x1xi1> to vector<8x128xi1>
    %173 = arith.select %172, %167, %133 : vector<8x128xi1>, vector<8x128xf32>
    %174 = vector.shape_cast %170 : vector<8x1xi1> to vector<8x1xi1>
    %175 = vector.broadcast %174 : vector<8x1xi1> to vector<8x128xi1>
    %176 = arith.select %175, %165, %136 : vector<8x128xi1>, vector<8x128xf32>
    %c4_i32 = arith.constant 4 : i32
    %177 = arith.index_cast %c4_i32 : i32 to index
    %c0_43 = arith.constant 0 : index
    %c0_44 = arith.constant 0 : index
    %178 = vector.load %arg8[%177, %c0_43, %c0_44] : memref<8x8x512xf32, #tpu.memory_space<vmem>>, vector<1x8x512xf32>
    %179 = vector.shape_cast %178 : vector<1x8x512xf32> to vector<8x512xf32>
    %180 = arith.truncf %173 : vector<8x128xf32> to vector<8x128xbf16>
    %cst_45 = arith.constant dense<0.000000e+00> : vector<8x512xf32>
    %181 = tpu.matmul %180, %13, %cst_45 {dimension_numbers = #tpu.dot_dimension_numbers<[1], [0], [0], [1], [0, 0, 1, 1], [], []>} : vector<8x128xbf16>, vector<128x512xbf16>, vector<8x512xf32> -> vector<8x512xf32>
    %182 = arith.addf %179, %181 : vector<8x512xf32>
    %183 = vector.extract_strided_slice %182 {offsets = [0, 0], sizes = [8, 128], strides = [1, 1]} : vector<8x512xf32> to vector<8x128xf32>
    %184 = arith.negf %183 : vector<8x128xf32>
    %185 = math.exp %184 : vector<8x128xf32>
    %cst_46 = arith.constant 1.000000e+00 : f32
    %186 = vector.broadcast %cst_46 : f32 to vector<8x128xf32>
    %187 = arith.addf %186, %185 : vector<8x128xf32>
    %188 = arith.divf %186, %187 : vector<8x128xf32>
    %189 = vector.extract_strided_slice %182 {offsets = [0, 128], sizes = [8, 128], strides = [1, 1]} : vector<8x512xf32> to vector<8x128xf32>
    %190 = arith.negf %189 : vector<8x128xf32>
    %191 = math.exp %190 : vector<8x128xf32>
    %cst_47 = arith.constant 1.000000e+00 : f32
    %192 = vector.broadcast %cst_47 : f32 to vector<8x128xf32>
    %193 = arith.addf %192, %191 : vector<8x128xf32>
    %194 = arith.divf %192, %193 : vector<8x128xf32>
    %195 = vector.extract_strided_slice %182 {offsets = [0, 256], sizes = [8, 128], strides = [1, 1]} : vector<8x512xf32> to vector<8x128xf32>
    %196 = math.tanh %195 : vector<8x128xf32>
    %197 = vector.extract_strided_slice %182 {offsets = [0, 384], sizes = [8, 128], strides = [1, 1]} : vector<8x512xf32> to vector<8x128xf32>
    %198 = arith.negf %197 : vector<8x128xf32>
    %199 = math.exp %198 : vector<8x128xf32>
    %cst_48 = arith.constant 1.000000e+00 : f32
    %200 = vector.broadcast %cst_48 : f32 to vector<8x128xf32>
    %201 = arith.addf %200, %199 : vector<8x128xf32>
    %202 = arith.divf %200, %201 : vector<8x128xf32>
    %203 = arith.mulf %194, %176 : vector<8x128xf32>
    %204 = arith.mulf %188, %196 : vector<8x128xf32>
    %205 = arith.addf %203, %204 : vector<8x128xf32>
    %206 = math.tanh %205 : vector<8x128xf32>
    %207 = arith.mulf %202, %206 : vector<8x128xf32>
    %208 = arith.addi %14, %c4_i32 : i32
    %209 = vector.broadcast %208 : i32 to vector<8x1xi32>
    %210 = arith.cmpi slt, %209, %12 : vector<8x1xi32>
    %211 = vector.shape_cast %210 : vector<8x1xi1> to vector<8x1xi1>
    %212 = vector.broadcast %211 : vector<8x1xi1> to vector<8x128xi1>
    %213 = arith.select %212, %207, %173 : vector<8x128xi1>, vector<8x128xf32>
    %214 = vector.shape_cast %210 : vector<8x1xi1> to vector<8x1xi1>
    %215 = vector.broadcast %214 : vector<8x1xi1> to vector<8x128xi1>
    %216 = arith.select %215, %205, %176 : vector<8x128xi1>, vector<8x128xf32>
    %c5_i32 = arith.constant 5 : i32
    %217 = arith.index_cast %c5_i32 : i32 to index
    %c0_49 = arith.constant 0 : index
    %c0_50 = arith.constant 0 : index
    %218 = vector.load %arg8[%217, %c0_49, %c0_50] : memref<8x8x512xf32, #tpu.memory_space<vmem>>, vector<1x8x512xf32>
    %219 = vector.shape_cast %218 : vector<1x8x512xf32> to vector<8x512xf32>
    %220 = arith.truncf %213 : vector<8x128xf32> to vector<8x128xbf16>
    %cst_51 = arith.constant dense<0.000000e+00> : vector<8x512xf32>
    %221 = tpu.matmul %220, %13, %cst_51 {dimension_numbers = #tpu.dot_dimension_numbers<[1], [0], [0], [1], [0, 0, 1, 1], [], []>} : vector<8x128xbf16>, vector<128x512xbf16>, vector<8x512xf32> -> vector<8x512xf32>
    %222 = arith.addf %219, %221 : vector<8x512xf32>
    %223 = vector.extract_strided_slice %222 {offsets = [0, 0], sizes = [8, 128], strides = [1, 1]} : vector<8x512xf32> to vector<8x128xf32>
    %224 = arith.negf %223 : vector<8x128xf32>
    %225 = math.exp %224 : vector<8x128xf32>
    %cst_52 = arith.constant 1.000000e+00 : f32
    %226 = vector.broadcast %cst_52 : f32 to vector<8x128xf32>
    %227 = arith.addf %226, %225 : vector<8x128xf32>
    %228 = arith.divf %226, %227 : vector<8x128xf32>
    %229 = vector.extract_strided_slice %222 {offsets = [0, 128], sizes = [8, 128], strides = [1, 1]} : vector<8x512xf32> to vector<8x128xf32>
    %230 = arith.negf %229 : vector<8x128xf32>
    %231 = math.exp %230 : vector<8x128xf32>
    %cst_53 = arith.constant 1.000000e+00 : f32
    %232 = vector.broadcast %cst_53 : f32 to vector<8x128xf32>
    %233 = arith.addf %232, %231 : vector<8x128xf32>
    %234 = arith.divf %232, %233 : vector<8x128xf32>
    %235 = vector.extract_strided_slice %222 {offsets = [0, 256], sizes = [8, 128], strides = [1, 1]} : vector<8x512xf32> to vector<8x128xf32>
    %236 = math.tanh %235 : vector<8x128xf32>
    %237 = vector.extract_strided_slice %222 {offsets = [0, 384], sizes = [8, 128], strides = [1, 1]} : vector<8x512xf32> to vector<8x128xf32>
    %238 = arith.negf %237 : vector<8x128xf32>
    %239 = math.exp %238 : vector<8x128xf32>
    %cst_54 = arith.constant 1.000000e+00 : f32
    %240 = vector.broadcast %cst_54 : f32 to vector<8x128xf32>
    %241 = arith.addf %240, %239 : vector<8x128xf32>
    %242 = arith.divf %240, %241 : vector<8x128xf32>
    %243 = arith.mulf %234, %216 : vector<8x128xf32>
    %244 = arith.mulf %228, %236 : vector<8x128xf32>
    %245 = arith.addf %243, %244 : vector<8x128xf32>
    %246 = math.tanh %245 : vector<8x128xf32>
    %247 = arith.mulf %242, %246 : vector<8x128xf32>
    %248 = arith.addi %14, %c5_i32 : i32
    %249 = vector.broadcast %248 : i32 to vector<8x1xi32>
    %250 = arith.cmpi slt, %249, %12 : vector<8x1xi32>
    %251 = vector.shape_cast %250 : vector<8x1xi1> to vector<8x1xi1>
    %252 = vector.broadcast %251 : vector<8x1xi1> to vector<8x128xi1>
    %253 = arith.select %252, %247, %213 : vector<8x128xi1>, vector<8x128xf32>
    %254 = vector.shape_cast %250 : vector<8x1xi1> to vector<8x1xi1>
    %255 = vector.broadcast %254 : vector<8x1xi1> to vector<8x128xi1>
    %256 = arith.select %255, %245, %216 : vector<8x128xi1>, vector<8x128xf32>
    %c6_i32 = arith.constant 6 : i32
    %257 = arith.index_cast %c6_i32 : i32 to index
    %c0_55 = arith.constant 0 : index
    %c0_56 = arith.constant 0 : index
    %258 = vector.load %arg8[%257, %c0_55, %c0_56] : memref<8x8x512xf32, #tpu.memory_space<vmem>>, vector<1x8x512xf32>
    %259 = vector.shape_cast %258 : vector<1x8x512xf32> to vector<8x512xf32>
    %260 = arith.truncf %253 : vector<8x128xf32> to vector<8x128xbf16>
    %cst_57 = arith.constant dense<0.000000e+00> : vector<8x512xf32>
    %261 = tpu.matmul %260, %13, %cst_57 {dimension_numbers = #tpu.dot_dimension_numbers<[1], [0], [0], [1], [0, 0, 1, 1], [], []>} : vector<8x128xbf16>, vector<128x512xbf16>, vector<8x512xf32> -> vector<8x512xf32>
    %262 = arith.addf %259, %261 : vector<8x512xf32>
    %263 = vector.extract_strided_slice %262 {offsets = [0, 0], sizes = [8, 128], strides = [1, 1]} : vector<8x512xf32> to vector<8x128xf32>
    %264 = arith.negf %263 : vector<8x128xf32>
    %265 = math.exp %264 : vector<8x128xf32>
    %cst_58 = arith.constant 1.000000e+00 : f32
    %266 = vector.broadcast %cst_58 : f32 to vector<8x128xf32>
    %267 = arith.addf %266, %265 : vector<8x128xf32>
    %268 = arith.divf %266, %267 : vector<8x128xf32>
    %269 = vector.extract_strided_slice %262 {offsets = [0, 128], sizes = [8, 128], strides = [1, 1]} : vector<8x512xf32> to vector<8x128xf32>
    %270 = arith.negf %269 : vector<8x128xf32>
    %271 = math.exp %270 : vector<8x128xf32>
    %cst_59 = arith.constant 1.000000e+00 : f32
    %272 = vector.broadcast %cst_59 : f32 to vector<8x128xf32>
    %273 = arith.addf %272, %271 : vector<8x128xf32>
    %274 = arith.divf %272, %273 : vector<8x128xf32>
    %275 = vector.extract_strided_slice %262 {offsets = [0, 256], sizes = [8, 128], strides = [1, 1]} : vector<8x512xf32> to vector<8x128xf32>
    %276 = math.tanh %275 : vector<8x128xf32>
    %277 = vector.extract_strided_slice %262 {offsets = [0, 384], sizes = [8, 128], strides = [1, 1]} : vector<8x512xf32> to vector<8x128xf32>
    %278 = arith.negf %277 : vector<8x128xf32>
    %279 = math.exp %278 : vector<8x128xf32>
    %cst_60 = arith.constant 1.000000e+00 : f32
    %280 = vector.broadcast %cst_60 : f32 to vector<8x128xf32>
    %281 = arith.addf %280, %279 : vector<8x128xf32>
    %282 = arith.divf %280, %281 : vector<8x128xf32>
    %283 = arith.mulf %274, %256 : vector<8x128xf32>
    %284 = arith.mulf %268, %276 : vector<8x128xf32>
    %285 = arith.addf %283, %284 : vector<8x128xf32>
    %286 = math.tanh %285 : vector<8x128xf32>
    %287 = arith.mulf %282, %286 : vector<8x128xf32>
    %288 = arith.addi %14, %c6_i32 : i32
    %289 = vector.broadcast %288 : i32 to vector<8x1xi32>
    %290 = arith.cmpi slt, %289, %12 : vector<8x1xi32>
    %291 = vector.shape_cast %290 : vector<8x1xi1> to vector<8x1xi1>
    %292 = vector.broadcast %291 : vector<8x1xi1> to vector<8x128xi1>
    %293 = arith.select %292, %287, %253 : vector<8x128xi1>, vector<8x128xf32>
    %294 = vector.shape_cast %290 : vector<8x1xi1> to vector<8x1xi1>
    %295 = vector.broadcast %294 : vector<8x1xi1> to vector<8x128xi1>
    %296 = arith.select %295, %285, %256 : vector<8x128xi1>, vector<8x128xf32>
    %c7_i32 = arith.constant 7 : i32
    %297 = arith.index_cast %c7_i32 : i32 to index
    %c0_61 = arith.constant 0 : index
    %c0_62 = arith.constant 0 : index
    %298 = vector.load %arg8[%297, %c0_61, %c0_62] : memref<8x8x512xf32, #tpu.memory_space<vmem>>, vector<1x8x512xf32>
    %299 = vector.shape_cast %298 : vector<1x8x512xf32> to vector<8x512xf32>
    %300 = arith.truncf %293 : vector<8x128xf32> to vector<8x128xbf16>
    %cst_63 = arith.constant dense<0.000000e+00> : vector<8x512xf32>
    %301 = tpu.matmul %300, %13, %cst_63 {dimension_numbers = #tpu.dot_dimension_numbers<[1], [0], [0], [1], [0, 0, 1, 1], [], []>} : vector<8x128xbf16>, vector<128x512xbf16>, vector<8x512xf32> -> vector<8x512xf32>
    %302 = arith.addf %299, %301 : vector<8x512xf32>
    %303 = vector.extract_strided_slice %302 {offsets = [0, 0], sizes = [8, 128], strides = [1, 1]} : vector<8x512xf32> to vector<8x128xf32>
    %304 = arith.negf %303 : vector<8x128xf32>
    %305 = math.exp %304 : vector<8x128xf32>
    %cst_64 = arith.constant 1.000000e+00 : f32
    %306 = vector.broadcast %cst_64 : f32 to vector<8x128xf32>
    %307 = arith.addf %306, %305 : vector<8x128xf32>
    %308 = arith.divf %306, %307 : vector<8x128xf32>
    %309 = vector.extract_strided_slice %302 {offsets = [0, 128], sizes = [8, 128], strides = [1, 1]} : vector<8x512xf32> to vector<8x128xf32>
    %310 = arith.negf %309 : vector<8x128xf32>
    %311 = math.exp %310 : vector<8x128xf32>
    %cst_65 = arith.constant 1.000000e+00 : f32
    %312 = vector.broadcast %cst_65 : f32 to vector<8x128xf32>
    %313 = arith.addf %312, %311 : vector<8x128xf32>
    %314 = arith.divf %312, %313 : vector<8x128xf32>
    %315 = vector.extract_strided_slice %302 {offsets = [0, 256], sizes = [8, 128], strides = [1, 1]} : vector<8x512xf32> to vector<8x128xf32>
    %316 = math.tanh %315 : vector<8x128xf32>
    %317 = vector.extract_strided_slice %302 {offsets = [0, 384], sizes = [8, 128], strides = [1, 1]} : vector<8x512xf32> to vector<8x128xf32>
    %318 = arith.negf %317 : vector<8x128xf32>
    %319 = math.exp %318 : vector<8x128xf32>
    %cst_66 = arith.constant 1.000000e+00 : f32
    %320 = vector.broadcast %cst_66 : f32 to vector<8x128xf32>
    %321 = arith.addf %320, %319 : vector<8x128xf32>
    %322 = arith.divf %320, %321 : vector<8x128xf32>
    %323 = arith.mulf %314, %296 : vector<8x128xf32>
    %324 = arith.mulf %308, %316 : vector<8x128xf32>
    %325 = arith.addf %323, %324 : vector<8x128xf32>
    %326 = math.tanh %325 : vector<8x128xf32>
    %327 = arith.mulf %322, %326 : vector<8x128xf32>
    %328 = arith.addi %14, %c7_i32 : i32
    %329 = vector.broadcast %328 : i32 to vector<8x1xi32>
    %330 = arith.cmpi slt, %329, %12 : vector<8x1xi32>
    %331 = vector.shape_cast %330 : vector<8x1xi1> to vector<8x1xi1>
    %332 = vector.broadcast %331 : vector<8x1xi1> to vector<8x128xi1>
    %333 = arith.select %332, %327, %293 : vector<8x128xi1>, vector<8x128xf32>
    %334 = vector.shape_cast %330 : vector<8x1xi1> to vector<8x1xi1>
    %335 = vector.broadcast %334 : vector<8x1xi1> to vector<8x128xi1>
    %336 = arith.select %335, %325, %296 : vector<8x128xi1>, vector<8x128xf32>
    %c8_i32_67 = arith.constant 8 : i32
    %c0_68 = arith.constant 0 : index
    %c0_69 = arith.constant 0 : index
    %337 = vector.load %arg9[%c0_68, %c0_69] : memref<8x128xf32, #tpu.memory_space<vmem>>, vector<8x128xf32>
    tpu.vector_store %arg9[%c0_68, %c0_69], %333 {strides = array<i32>} : memref<8x128xf32, #tpu.memory_space<vmem>>, vector<8x128xf32>,
    %c0_70 = arith.constant 0 : index
    %c0_71 = arith.constant 0 : index
    %338 = vector.load %arg10[%c0_70, %c0_71] : memref<8x128xf32, #tpu.memory_space<vmem>>, vector<8x128xf32>
    tpu.vector_store %arg10[%c0_70, %c0_71], %336 {strides = array<i32>} : memref<8x128xf32, #tpu.memory_space<vmem>>, vector<8x128xf32>,
    %c0_72 = arith.constant 0 : index
    %c0_73 = arith.constant 0 : index
    %339 = vector.load %arg7[%c0_72, %c0_73] : memref<8x128xf32, #tpu.memory_space<vmem>>, vector<8x128xf32>
    tpu.vector_store %arg7[%c0_72, %c0_73], %333 {strides = array<i32>} : memref<8x128xf32, #tpu.memory_space<vmem>>, vector<8x128xf32>,
    return
  }
  func.func @transform_0(%arg0: i32, %arg1: i32) -> (i32, i32) {
    %c0_i32 = arith.constant 0 : i32
    %c0_i32_0 = arith.constant 0 : i32
    return %arg0, %c0_i32 : i32, i32
  }
  func.func @transform_1(%arg0: i32, %arg1: i32) -> (i32, i32, i32) {
    %c0_i32 = arith.constant 0 : i32
    %c0_i32_0 = arith.constant 0 : i32
    return %arg1, %arg0, %c0_i32 : i32, i32, i32
  }
  func.func @transform_2(%arg0: i32, %arg1: i32) -> (i32, i32) {
    %c0_i32 = arith.constant 0 : i32
    %c0_i32_0 = arith.constant 0 : i32
    %c0_i32_1 = arith.constant 0 : i32
    return %c0_i32, %c0_i32_0 : i32, i32
  }
  func.func @transform_3(%arg0: i32, %arg1: i32) -> (i32, i32) {
    %c0_i32 = arith.constant 0 : i32
    %c0_i32_0 = arith.constant 0 : i32
    %c0_i32_1 = arith.constant 0 : i32
    return %c0_i32, %c0_i32_0 : i32, i32
  }
  func.func @transform_4(%arg0: i32, %arg1: i32) -> (i32, i32) {
    %c0_i32 = arith.constant 0 : i32
    %c0_i32_0 = arith.constant 0 : i32
    %c0_i32_1 = arith.constant 0 : i32
    return %c0_i32, %c0_i32_0 : i32, i32
  }
  func.func @transform_5(%arg0: i32, %arg1: i32) -> (i32, i32) {
    %c0_i32 = arith.constant 0 : i32
    %c0_i32_0 = arith.constant 0 : i32
    return %arg0, %c0_i32 : i32, i32
  }
}

</mosaic_0001>

<bundles_post_ra>
// kernel: lstm_model_forward.1
= control target key start
LH: loop header
LB: loop body
LE: loop exit
PB: predicated region body
PF: predicated region fallthrough
CT: control target
= control target key end

     0   :  { %s2426_s18 = smov 0   ;;  %s2428_s19 = smov 0   ;;  %s3374_s0 = inlined_call_operand.vmem [shape: s32[8,1], index: 0, kind: input, shape index: {}]   ;;  %s3375_s1 = inlined_call_operand.vmem [shape: bf16[16,8,128], index: 1, kind: input, shape index: {}]   ;;  %s3376_s2 = inlined_call_operand.vmem [shape: bf16[128,512], index: 2, kind: input, shape index: {}]   ;;  %s3377_s3 = inlined_call_operand.vmem [shape: bf16[128,512], index: 3, kind: input, shape index: {}]   ;;  %s3378_s4 = inlined_call_operand.vmem [shape: f32[1,512], index: 4, kind: input, shape index: {}]   ;;  %s3379_s5 = inlined_call_operand.vmem [shape: f32[8,128], index: 5, kind: output, shape index: {}]  }
   0x1   :  { %s2430_s20 = smov 0  }
   0x2 LB: > { %s24_s21 = sadd.s32 1, %s2388_s19  ;;  %p1982_p0 = scmp.ge.s32.totalorder %s2392_s20, 1  ;;  %s2392_s20 = sphi %s2430_s20, %s15_s20   ;;  %s2388_s19 = sphi %s2428_s19, %s3426_s19   ;;  %s2384_s18 = sphi %s2426_s18, %s3425_s18  }
   0x3   : > { %p25_p1 = scmp.ge.s32.totalorder %s24_s21, 2  ;;  %p214_p2 = scmp.lt.s32.totalorder %s2392_s20, 3 }
   0x5   : > { %s3428_s21 = smov (%p25_p1, %s24_s21), 0  ;;  %p215_p3 = pnand %p1982_p0, %p214_p2 }
   0x7   : > { %218 = sbr.rel (%p215_p3) target bundleno = 2103 (0x837), region = 40 }
   0xc   : > { %s2444_s22 = sshll.u32 %s2384_s18, 3  ;;  %p1985_p5 = scmp.ne.s32.totalorder %s2384_s18, 0 }
   0xd   : > { %p253_p4 = scmp.lt.s32.totalorder %s2444_s22, 15 }
   0xe   : > { %269 = sbr.rel (%p1985_p5) target bundleno = 21 (0x15), region = 44 }
   0xf   : > { %s254_s23 = scalar_select %p253_p4, %s2444_s22, 15 }
  0x11   : > { %s1984_s24 = sshll.u32 %s254_s23, 2 }
  0x12   : > { %s2451_s27 = scalar_lea.vmem %s3375_s1, %s1984_s24 }
  0x13   : > { %v2394_v0 = vmov 0.0  }
  0x14   : > { %270 = vst [vmem:[#allocation3] sm:$0xff] %v2394_v0  ;;  %271 = vst [vmem:[#allocation4] sm:$0xff] %v2394_v0 }
  0x15 PF: > { %v2110_v1 = vld [vmem:[%s3376_s2 + $0xe4] ss:$16 sps:$4 sm:$0xff]   ;;  %v2112_v2 = vld [vmem:[%s3376_s2 + $0xec] ss:$16 sps:$4 sm:$0xff]   ;;  %v3380_v3 = vmov 0   ;;  %s1132_s23 = sadd.s32 1, %s2444_s22  ;;  %v1007_v54 = vstv %s2444_s22 }
  0x16   : > { %550 = vmatprep.mubr.bf16.mxu0 %v3380_v3  ;;  %623 = vmatprep.mubr.bf16.mxu1 %v3380_v3  ;;  %v2114_v4 = vld [vmem:[%s3376_s2 + $0xe0] ss:$16 sps:$4 sm:$0xff]   ;;  %v2115_v5 = vld [vmem:[%s3376_s2 + $0xe8] ss:$16 sps:$4 sm:$0xff]   ;;  %v2116_v6 = vld [vmem:[%s3376_s2 + $0xc4] ss:$16 sps:$4 sm:$0xff]   ;;  %v1133_v55 = vstv %s1132_s23 }
  0x17   : > { %518 = vmatprep.subr.bf16.mxu0 %v2110_v1  ;;  %2108 = vset.pattern.permute.xlu0 %v3380_v3  ;;  %v2118_v7 = vld [vmem:[%s3376_s2 + $0xcc] ss:$16 sps:$4 sm:$0xff]   ;;  %v2120_v8 = vld [vmem:[%s3376_s2 + $0xc0] ss:$16 sps:$4 sm:$0xff]   ;;  %v2121_v9 = vld [vmem:[%s3376_s2 + $0xc8] ss:$16 sps:$4 sm:$0xff]  }
  0x18   : > { %591 = vmatprep.subr.bf16.mxu1 %v2112_v2  ;;  %2109 = vset.pattern.permute.xlu1 %v3380_v3  ;;  %v2122_v10 = vld [vmem:[%s3376_s2 + $0xa4] ss:$16 sps:$4 sm:$0xff]   ;;  %v2124_v11 = vld [vmem:[%s3376_s2 + $0xac] ss:$16 sps:$4 sm:$0xff]   ;;  %v2126_v12 = vld [vmem:[%s3376_s2 + $0xa0] ss:$16 sps:$4 sm:$0xff]  }
  0x19   : > { %519 = vmatpush1.bf16.msra.mxu0 %v2114_v4  ;;  %592 = vmatpush1.bf16.msra.mxu1 %v2115_v5  ;;  %v2127_v13 = vld [vmem:[%s3376_s2 + $0xa8] ss:$16 sps:$4 sm:$0xff]   ;;  %v2128_v14 = vld [vmem:[%s3376_s2 + $0x84] ss:$16 sps:$4 sm:$0xff]   ;;  %v2130_v15 = vld [vmem:[%s3376_s2 + $0x8c] ss:$16 sps:$4 sm:$0xff]  }
  0x1a   : > { %520 = vmatprep.subr.bf16.mxu0 %v2116_v6  ;;  %593 = vmatprep.subr.bf16.mxu1 %v2118_v7  ;;  %v2132_v16 = vld [vmem:[%s3376_s2 + $0x80] ss:$16 sps:$4 sm:$0xff]   ;;  %v2133_v17 = vld [vmem:[%s3376_s2 + $0x88] ss:$16 sps:$4 sm:$0xff]   ;;  %v2134_v18 = vld [vmem:[%s3376_s2 + $0x64] ss:$16 sps:$4 sm:$0xff]  }
  0x1b   : > { %v2136_v19 = vld [vmem:[%s3376_s2 + $0x6c] ss:$16 sps:$4 sm:$0xff]   ;;  %v2138_v20 = vld [vmem:[%s3376_s2 + $0x60] ss:$16 sps:$4 sm:$0xff]   ;;  %v2139_v21 = vld [vmem:[%s3376_s2 + $0x68] ss:$16 sps:$4 sm:$0xff]  }
  0x1c   : > { %v2140_v22 = vld [vmem:[%s3376_s2 + $0x44] ss:$16 sps:$4 sm:$0xff]   ;;  %v2142_v23 = vld [vmem:[%s3376_s2 + $0x4c] ss:$16 sps:$4 sm:$0xff]   ;;  %v2144_v24 = vld [vmem:[%s3376_s2 + $0x40] ss:$16 sps:$4 sm:$0xff]  }
  0x1d   : > { %521 = vmatpush1.bf16.msra.mxu0 %v2120_v8  ;;  %594 = vmatpush1.bf16.msra.mxu1 %v2121_v9  ;;  %v2145_v25 = vld [vmem:[%s3376_s2 + $0x48] ss:$16 sps:$4 sm:$0xff]   ;;  %v2146_v26 = vld [vmem:[%s3376_s2 + $0x24] ss:$16 sps:$4 sm:$0xff]   ;;  %v2148_v27 = vld [vmem:[%s3376_s2 + $0x2c] ss:$16 sps:$4 sm:$0xff]  }
  0x1e   : > { %522 = vmatprep.subr.bf16.mxu0 %v2122_v10  ;;  %595 = vmatprep.subr.bf16.mxu1 %v2124_v11  ;;  %v2150_v28 = vld [vmem:[%s3376_s2 + $0x20] ss:$16 sps:$4 sm:$0xff]   ;;  %v2151_v29 = vld [vmem:[%s3376_s2 + $0x28] ss:$16 sps:$4 sm:$0xff]   ;;  %v2152_v30 = vld [vmem:[%s3376_s2 + $0x4] ss:$16 sps:$4 sm:$0xff]  }
  0x1f   : > { %v2154_v31 = vld [vmem:[%s3376_s2 + $0xc] ss:$16 sps:$4 sm:$0xff]   ;;  %v2156_v32 = vld [vmem:[%s3376_s2] ss:$16 sps:$4 sm:$0xff]   ;;  %v2157_v33 = vld [vmem:[%s3376_s2 + $0x8] ss:$16 sps:$4 sm:$0xff]  }
  0x20   : > { %v2556_v34 = vld [vmem:[%s3377_s3 + $0xe4] ss:$16 sps:$4 sm:$0xff]   ;;  %v2561_v35 = vld [vmem:[%s3377_s3 + $0xec] ss:$16 sps:$4 sm:$0xff]   ;;  %v2567_v37 = vld [vmem:[%s3377_s3 + $0xe0] ss:$16 sps:$4 sm:$0xff]  }
  0x21   : > { %523 = vmatpush1.bf16.msra.mxu0 %v2126_v12  ;;  %596 = vmatpush1.bf16.msra.mxu1 %v2127_v13  ;;  %v2158_v36 = vld [vmem:[%s2451_s27] sm:$0xff]   ;;  %v2572_v38 = vld [vmem:[%s3377_s3 + $0xe8] ss:$16 sps:$4 sm:$0xff]   ;;  %v2584_v40 = vld [vmem:[%s3377_s3 + $0xcc] ss:$16 sps:$4 sm:$0xff]   ;;  %s1510_s14 = sadd.s32 4, %s2444_s22 }
  0x22   : > { %524 = vmatprep.subr.bf16.mxu0 %v2128_v14  ;;  %597 = vmatprep.subr.bf16.mxu1 %v2130_v15  ;;  %v2579_v39 = vld [vmem:[%s3377_s3 + $0xc4] ss:$16 sps:$4 sm:$0xff]   ;;  %v2589_v41 = vld [vmem:[%s3377_s3 + $0xc0] ss:$16 sps:$4 sm:$0xff]   ;;  %v2596_v42 = vld [vmem:[%s3377_s3 + $0xc8] ss:$16 sps:$4 sm:$0xff]   ;;  %v1511_v5 = vstv %s1510_s14 }
  0x23   : > { %v2603_v43 = vld [vmem:[%s3377_s3 + $0xa4] ss:$16 sps:$4 sm:$0xff]   ;;  %v2608_v44 = vld [vmem:[%s3377_s3 + $0xac] ss:$16 sps:$4 sm:$0xff]   ;;  %v2616_v46 = vld [vmem:[%s3377_s3 + $0xa0] ss:$16 sps:$4 sm:$0xff]  }
  0x24   : > { %v2171_v45 = vld [vmem:[%s2451_s27 + $0x8] sm:$0xff]   ;;  %v2628_v48 = vld [vmem:[%s3377_s3 + $0x84] ss:$16 sps:$4 sm:$0xff]   ;;  %v2640_v50 = vld [vmem:[%s3377_s3 + $0x80] ss:$16 sps:$4 sm:$0xff]   ;;  %s1762_s7 = sadd.s32 6, %s2444_s22 }
  0x25   : > { %525 = vmatpush1.bf16.msra.mxu0 %v2132_v16  ;;  %598 = vmatpush1.bf16.msra.mxu1 %v2133_v17  ;;  %v2621_v47 = vld [vmem:[%s3377_s3 + $0xa8] ss:$16 sps:$4 sm:$0xff]   ;;  %v2635_v49 = vld [vmem:[%s3377_s3 + $0x8c] ss:$16 sps:$4 sm:$0xff]   ;;  %v2653_v52 = vld [vmem:[%s3377_s3 + $0x64] ss:$16 sps:$4 sm:$0xff]   ;;  %v1763_v11 = vstv %s1762_s7 }
  0x26   : > { %526 = vmatprep.subr.bf16.mxu0 %v2134_v18  ;;  %599 = vmatprep.subr.bf16.mxu1 %v2136_v19  ;;  %v2645_v51 = vld [vmem:[%s3377_s3 + $0x88] ss:$16 sps:$4 sm:$0xff]   ;;  %v2660_v53 = vld [vmem:[%s3377_s3 + $0x6c] ss:$16 sps:$4 sm:$0xff]   ;;  %v2184_v56 = vld [vmem:[%s2451_s27 + $0x10] sm:$0xff]   ;;  %v314_v18 = vlaneseq  ;;  %s1258_s17 = sadd.s32 2, %s2444_s22 }
  0x27   : > { %v2669_v57 = vld [vmem:[%s3374_s0] sm:$0xff]  ;;  %v2681_v59 = vld [vmem:[%s3377_s3 + $0x68] ss:$16 sps:$4 sm:$0xff]   ;;  %v2694_v61 = vld [vmem:[%s3377_s3 + $0x4c] ss:$16 sps:$4 sm:$0xff]   ;;  %s1384_s18 = sadd.s32 3, %s2444_s22 }
  0x28   : > { %v2676_v58 = vld [vmem:[%s3377_s3 + $0x60] ss:$16 sps:$4 sm:$0xff]   ;;  %vm1008_vm0 = vcmp.lt.s32.totalorder %v1007_v54, %v2669_v57  ;;  %v2689_v60 = vld [vmem:[%s3377_s3 + $0x44] ss:$16 sps:$4 sm:$0xff]   ;;  %vm1134_vm1 = vcmp.lt.s32.totalorder %v1133_v55, %v2669_v57  ;;  %v2709_v0 = vld [vmem:[%s3377_s3 + $0x48] ss:$16 sps:$4 sm:$0xff]   ;;  %vm1512_vm2 = vcmp.lt.s32.totalorder %v1511_v5, %v2669_v57  ;;  %vm1764_vm3 = vcmp.lt.s32.totalorder %v1763_v11, %v2669_v57 }
  0x29   : > { %527 = vmatpush1.bf16.msra.mxu0 %v2138_v20  ;;  %600 = vmatpush1.bf16.msra.mxu1 %v2139_v21  ;;  %v1009_v62 = vsel %vm1008_vm0, 1, %v3380_v3  ;;  %v2704_v63 = vld [vmem:[%s3377_s3 + $0x40] ss:$16 sps:$4 sm:$0xff]   ;;  %v1135_v1 = vsel %vm1134_vm1, 1, %v3380_v3  ;;  %v2717_v2 = vld [vmem:[%s3377_s3 + $0x24] ss:$16 sps:$4 sm:$0xff]  }
  0x2a   : > { %528 = vmatprep.subr.bf16.mxu0 %v2140_v22  ;;  %601 = vmatprep.subr.bf16.mxu1 %v2142_v23  ;;  %v2722_v4 = vld [vmem:[%s3377_s3 + $0x2c] ss:$16 sps:$4 sm:$0xff]   ;;  %v2732_v7 = vld [vmem:[%s3377_s3 + $0x20] ss:$16 sps:$4 sm:$0xff]   ;;  %v2737_v8 = vld [vmem:[%s3377_s3 + $0x28] ss:$16 sps:$4 sm:$0xff]  }
  0x2b   : > { %1011 = vperm.xlu0 %2108, %v1009_v62   ;;  %v2197_v6 = vld [vmem:[%s2451_s27 + $0x18] sm:$0xff]   ;;  %v2745_v9 = vld [vmem:[%s3377_s3 + $0x4] ss:$16 sps:$4 sm:$0xff]   ;;  %v2758_v12 = vld [vmem:[%s3377_s3] ss:$16 sps:$4 sm:$0xff]   ;;  %v1513_v15 = vsel %vm1512_vm2, 1, %v3380_v3 }
  0x2c   : > { %v2750_v10 = vld [vmem:[%s3377_s3 + $0xc] ss:$16 sps:$4 sm:$0xff]   ;;  %v2763_v13 = vld [vmem:[%s3377_s3 + $0x8] ss:$16 sps:$4 sm:$0xff]   ;;  %v2765_v14 = vld [vmem:[#allocation3] sm:$0xff]  ;;  %v1765_v17 = vsel %vm1764_vm3, 1, %v3380_v3 }
  0x2d   : > { %529 = vmatpush1.bf16.msra.mxu0 %v2144_v24  ;;  %602 = vmatpush1.bf16.msra.mxu1 %v2145_v25  ;;  %v736_v16 = vpack.c.bf16 %v2765_v14, %v2765_v14  ;;  %v315_v19 = vshrl.u32 %v314_v18, 7  ;;  %v312_v23 = vld [vmem:[%s3378_s4] sm:$0xf]  ;;  %s1636_s23 = sadd.s32 5, %s2444_s22  ;;  %s1888_s24 = sadd.s32 7, %s2444_s22 }
  0x2e   : > { %530 = vmatprep.subr.bf16.mxu0 %v2146_v26  ;;  %603 = vmatprep.subr.bf16.mxu1 %v2148_v27 }
  0x2f   : > { %1137 = vperm.xlu0 %2108, %v1135_v1   ;;  %v324_v20 = vsub.s32 2, %v315_v19  ;;  %v316_v21 = vsub.s32 0, %v315_v19  ;;  %v328_v22 = vsub.s32 3, %v315_v19  ;;  %v320_v27 = vsub.s32 1, %v315_v19 }
  0x31   : > { %531 = vmatpush1.bf16.msra.mxu0 %v2150_v28  ;;  %604 = vmatpush1.bf16.msra.mxu1 %v2151_v29  ;;  %v2821_v26 = vrot.slane %v312_v23, %v324_v20 }
  0x32   : > { %532 = vmatprep.subr.bf16.mxu0 %v2152_v30  ;;  %605 = vmatprep.subr.bf16.mxu1 %v2154_v31  ;;  %v317_v30 = vrot.slane %v312_v23, %v316_v21  ;;  %v2827_v31 = vrot.slane %v312_v23, %v328_v22 }
  0x33   : > { %1515 = vperm.xlu0 %2108, %v1513_v15  }
  0x35   : > { %533 = vmatpush1.bf16.msra.mxu0 %v2156_v32  ;;  %606 = vmatpush1.bf16.msra.mxu1 %v2157_v33 }
  0x36   : > { %897 = vmatprep.subr.bf16.mxu0 %v2556_v34  ;;  %938 = vmatprep.subr.bf16.mxu1 %v2561_v35 }
  0x37   : > { %1767 = vperm.xlu0 %2108, %v1765_v17  }
  0x38   : > { %551 = vmatmul.mubr.bf16.vlgmr.msra.gmra.mxu0 %v2158_v36  ;;  %624 = vmatmul.mubr.bf16.vlgmr.msra.gmra.mxu1 %v2158_v36  ;;  %v321_v36 = vrot.slane %v312_v23, %v320_v27 }
  0x39   : > { %898 = vmatpush1.bf16.msra.mxu0 %v2567_v37  ;;  %939 = vmatpush1.bf16.msra.mxu1 %v2572_v38 }
  0x3a   : > { %899 = vmatprep.subr.bf16.mxu0 %v2579_v39  ;;  %940 = vmatprep.subr.bf16.mxu1 %v2584_v40 }
  0x3b   : > { %560 = vmatprep.mubr.bf16.mxu0 %v3380_v3  ;;  %633 = vmatprep.mubr.bf16.mxu1 %v3380_v3 }
  0x3d   : > { %900 = vmatpush1.bf16.msra.mxu0 %v2589_v41  ;;  %941 = vmatpush1.bf16.msra.mxu1 %v2596_v42 }
  0x3e   : > { %901 = vmatprep.subr.bf16.mxu0 %v2603_v43  ;;  %942 = vmatprep.subr.bf16.mxu1 %v2608_v44 }
  0x40   : > { %561 = vmatmul.mubr.bf16.gmra.mxu0 %v2171_v45  ;;  %634 = vmatmul.mubr.bf16.gmra.mxu1 %v2171_v45 }
  0x41   : > { %902 = vmatpush1.bf16.msra.mxu0 %v2616_v46  ;;  %943 = vmatpush1.bf16.msra.mxu1 %v2621_v47 }
  0x42   : > { %903 = vmatprep.subr.bf16.mxu0 %v2628_v48  ;;  %944 = vmatprep.subr.bf16.mxu1 %v2635_v49 }
  0x43   : > { %570 = vmatprep.mubr.bf16.mxu0 %v3380_v3  ;;  %643 = vmatprep.mubr.bf16.mxu1 %v3380_v3 }
  0x45   : > { %904 = vmatpush1.bf16.msra.mxu0 %v2640_v50  ;;  %945 = vmatpush1.bf16.msra.mxu1 %v2645_v51 }
  0x46   : > { %905 = vmatprep.subr.bf16.mxu0 %v2653_v52  ;;  %946 = vmatprep.subr.bf16.mxu1 %v2660_v53 }
  0x48   : > { %571 = vmatmul.mubr.bf16.gmra.mxu0 %v2184_v56  ;;  %644 = vmatmul.mubr.bf16.gmra.mxu1 %v2184_v56 }
  0x49   : > { %906 = vmatpush1.bf16.msra.mxu0 %v2676_v58  ;;  %947 = vmatpush1.bf16.msra.mxu1 %v2681_v59 }
  0x4a   : > { %907 = vmatprep.subr.bf16.mxu0 %v2689_v60  ;;  %948 = vmatprep.subr.bf16.mxu1 %v2694_v61 }
  0x4b   : > { %580 = vmatprep.mubr.bf16.mxu0 %v3380_v3  ;;  %653 = vmatprep.mubr.bf16.mxu1 %v3380_v3 }
  0x4d   : > { %908 = vmatpush1.bf16.msra.mxu0 %v2704_v63  ;;  %949 = vmatpush1.bf16.msra.mxu1 %v2709_v0 }
  0x4e   : > { %909 = vmatprep.subr.bf16.mxu0 %v2717_v2  ;;  %950 = vmatprep.subr.bf16.mxu1 %v2722_v4 }
  0x50   : > { %581 = vmatmul.mubr.bf16.gmra.mxu0 %v2197_v6  ;;  %654 = vmatmul.mubr.bf16.gmra.mxu1 %v2197_v6 }
  0x51   : > { %910 = vmatpush1.bf16.msra.mxu0 %v2732_v7  ;;  %951 = vmatpush1.bf16.msra.mxu1 %v2737_v8 }
  0x52   : > { %911 = vmatprep.subr.bf16.mxu0 %v2745_v9  ;;  %952 = vmatprep.subr.bf16.mxu1 %v2750_v10 }
  0x53   : > { %929 = vmatprep.mubr.bf16.mxu0 %v3380_v3  ;;  %970 = vmatprep.mubr.bf16.mxu1 %v3380_v3 }
  0x55   : > { %912 = vmatpush1.bf16.msra.mxu0 %v2758_v12  ;;  %953 = vmatpush1.bf16.msra.mxu1 %v2763_v13 }
  0x56   : > { %1022 = vmatprep.subr.bf16.mxu0 %v2556_v34  ;;  %1063 = vmatprep.subr.bf16.mxu1 %v2561_v35 }
  0x58   : > { %930 = vmatmul.mubr.bf16.vlgmr.msra.gmra.mxu0 %v736_v16  ;;  %971 = vmatmul.mubr.bf16.vlgmr.msra.gmra.mxu1 %v736_v16 }
  0x59   : > { %1023 = vmatpush1.bf16.msra.mxu0 %v2567_v37  ;;  %1064 = vmatpush1.bf16.msra.mxu1 %v2572_v38 }
  0x5a   : > { %1024 = vmatprep.subr.bf16.mxu0 %v2579_v39  ;;  %1065 = vmatprep.subr.bf16.mxu1 %v2584_v40 }
  0x5b   : > { %1054 = vmatprep.mubr.bf16.mxu0 %v3380_v3  ;;  %1095 = vmatprep.mubr.bf16.mxu1 %v3380_v3 }
  0x5d   : > { %1025 = vmatpush1.bf16.msra.mxu0 %v2589_v41  ;;  %1066 = vmatpush1.bf16.msra.mxu1 %v2596_v42 }
  0x5e   : > { %1026 = vmatprep.subr.bf16.mxu0 %v2603_v43  ;;  %1067 = vmatprep.subr.bf16.mxu1 %v2608_v44 }
  0x61   : > { %1027 = vmatpush1.bf16.msra.mxu0 %v2616_v46  ;;  %1068 = vmatpush1.bf16.msra.mxu1 %v2621_v47 }
  0x62   : > { %1028 = vmatprep.subr.bf16.mxu0 %v2628_v48  ;;  %1069 = vmatprep.subr.bf16.mxu1 %v2635_v49 }
  0x65   : > { %1029 = vmatpush1.bf16.msra.mxu0 %v2640_v50  ;;  %1070 = vmatpush1.bf16.msra.mxu1 %v2645_v51 }
  0x66   : > { %1030 = vmatprep.subr.bf16.mxu0 %v2653_v52  ;;  %1071 = vmatprep.subr.bf16.mxu1 %v2660_v53 }
  0x69   : > { %1031 = vmatpush1.bf16.msra.mxu0 %v2676_v58  ;;  %1072 = vmatpush1.bf16.msra.mxu1 %v2681_v59 }
  0x6a   : > { %1032 = vmatprep.subr.bf16.mxu0 %v2689_v60  ;;  %1073 = vmatprep.subr.bf16.mxu1 %v2694_v61 }
  0x6d   : > { %1033 = vmatpush1.bf16.msra.mxu0 %v2704_v63  ;;  %1074 = vmatpush1.bf16.msra.mxu1 %v2709_v0 }
  0x6e   : > { %1034 = vmatprep.subr.bf16.mxu0 %v2717_v2  ;;  %1075 = vmatprep.subr.bf16.mxu1 %v2722_v4 }
  0x71   : > { %1035 = vmatpush1.bf16.msra.mxu0 %v2732_v7  ;;  %1076 = vmatpush1.bf16.msra.mxu1 %v2737_v8 }
  0x72   : > { %1036 = vmatprep.subr.bf16.mxu0 %v2745_v9  ;;  %1077 = vmatprep.subr.bf16.mxu1 %v2750_v10 }
  0x75   : > { %1037 = vmatpush1.bf16.msra.mxu0 %v2758_v12  ;;  %1078 = vmatpush1.bf16.msra.mxu1 %v2763_v13 }
  0x76   : > { %1148 = vmatprep.subr.bf16.mxu0 %v2556_v34  ;;  %1189 = vmatprep.subr.bf16.mxu1 %v2561_v35 }
  0xf8   : > { %v2817_v24 = vpop.f32.mrf.mxu0  ;;  %v2819_v25 = vpop.f32.mrf.mxu1 }
  0xfa   : > { %v2823_v28 = vpop.f32.mrf.mxu0  ;;  %v2825_v29 = vpop.f32.mrf.mxu1 }
  0xfc   : > { %v556_v32 = vpop.f32.mrf.mxu0  ;;  %v629_v33 = vpop.f32.mrf.mxu1 }
  0xfd   : > { %v2829_v45 = vadd.f32 %v556_v32, %v317_v30  ;;  %v2832_v54 = vadd.f32 %v629_v33, %v2821_v26 }
  0xfe   : > { %v558_v55 = vpop.f32.mrf.mxu0  ;;  %v631_v56 = vpop.f32.mrf.mxu1 }
  0xff   : > { %v2834_v62 = vadd.f32 %v558_v55, %v321_v36  ;;  %v2837_v1 = vadd.f32 %v631_v56, %v2827_v31 }
 0x100   : > { %v562_v5 = vpop.f32.mrf.mxu0  ;;  %v635_v6 = vpop.f32.mrf.mxu1 }
 0x101   : > { %v2839_v11 = vadd.f32 %v562_v5, %v317_v30  ;;  %v2842_v15 = vadd.f32 %v635_v6, %v2821_v26 }
 0x102   : > { %v564_v16 = vpop.f32.mrf.mxu0  ;;  %v637_v17 = vpop.f32.mrf.mxu1 }
 0x103   : > { %3382 = vst [vmem:[#allocation5_spill] sm:$0xff] %v2842_v15  ;;  %v2844_v18 = vadd.f32 %v564_v16, %v321_v36  ;;  %v2847_v19 = vadd.f32 %v637_v17, %v2827_v31 }
 0x104   : > { %v566_v20 = vpop.f32.mrf.mxu0  ;;  %v639_v21 = vpop.f32.mrf.mxu1 }
 0x105   : > { %3383 = vst [vmem:[#allocation6_spill] sm:$0xff] %v2844_v18  ;;  %3384 = vst [vmem:[#allocation7_spill] sm:$0xff] %v2847_v19  ;;  %v2849_v22 = vadd.f32 %v566_v20, %v317_v30  ;;  %v2852_v23 = vadd.f32 %v639_v21, %v2821_v26 }
 0x106   : > { %v568_v27 = vpop.f32.mrf.mxu0  ;;  %v641_v32 = vpop.f32.mrf.mxu1 }
 0x107   : > { %3385 = vst [vmem:[#allocation8_spill] sm:$0xff] %v2849_v22  ;;  %3386 = vst [vmem:[#allocation9_spill] sm:$0xff] %v2852_v23  ;;  %v2854_v33 = vadd.f32 %v568_v27, %v321_v36  ;;  %v2857_v55 = vadd.f32 %v641_v32, %v2827_v31 }
 0x108   : > { %v572_v56 = vpop.f32.mrf.mxu0  ;;  %v645_v5 = vpop.f32.mrf.mxu1 }
 0x109   : > { %3387 = vst [vmem:[#allocation10_spill] sm:$0xff] %v2854_v33  ;;  %3388 = vst [vmem:[#allocation11_spill] sm:$0xff] %v2857_v55  ;;  %v2859_v6 = vadd.f32 %v572_v56, %v317_v30  ;;  %v2862_v16 = vadd.f32 %v645_v5, %v2821_v26 }
 0x10a   : > { %v574_v17 = vpop.f32.mrf.mxu0  ;;  %v647_v20 = vpop.f32.mrf.mxu1 }
 0x10b   : > { %3389 = vst [vmem:[#allocation12_spill] sm:$0xff] %v2859_v6  ;;  %3390 = vst [vmem:[#allocation13_spill] sm:$0xff] %v2862_v16  ;;  %v2864_v3 = vadd.f32 %v574_v17, %v321_v36  ;;  %v2867_v21 = vadd.f32 %v647_v20, %v2827_v31 }
 0x10c   : > { %v576_v23 = vpop.f32.mrf.mxu0  ;;  %v649_v27 = vpop.f32.mrf.mxu1 }
 0x10d   : > { %3391 = vst [vmem:[#allocation14_spill] sm:$0xff] %v2864_v3  ;;  %3392 = vst [vmem:[#allocation15_spill] sm:$0xff] %v2867_v21  ;;  %v2869_v33 = vadd.f32 %v576_v23, %v317_v30  ;;  %v2872_v32 = vadd.f32 %v649_v27, %v2821_v26 }
 0x10e   : > { %v578_v55 = vpop.f32.mrf.mxu0  ;;  %v651_v56 = vpop.f32.mrf.mxu1 }
 0x10f   : > { %3393 = vst [vmem:[#allocation16_spill] sm:$0xff] %v2869_v33  ;;  %3394 = vst [vmem:[#allocation17_spill] sm:$0xff] %v2872_v32  ;;  %v2874_v6 = vadd.f32 %v578_v55, %v321_v36  ;;  %v2877_v5 = vadd.f32 %v651_v56, %v2827_v31 }
 0x110   : > { %v582_v16 = vpop.f32.mrf.mxu0  ;;  %v655_v17 = vpop.f32.mrf.mxu1 }
 0x111   : > { %3395 = vst [vmem:[#allocation18_spill] sm:$0xff] %v2874_v6  ;;  %3396 = vst [vmem:[#allocation19_spill] sm:$0xff] %v2877_v5  ;;  %v2879_v3 = vadd.f32 %v582_v16, %v317_v30  ;;  %v2882_v20 = vadd.f32 %v655_v17, %v2821_v26 }
 0x112   : > { %v584_v21 = vpop.f32.mrf.mxu0  ;;  %v657_v23 = vpop.f32.mrf.mxu1 }
 0x113   : > { %3397 = vst [vmem:[#allocation20_spill] sm:$0xff] %v2879_v3  ;;  %3398 = vst [vmem:[#allocation21_spill] sm:$0xff] %v2882_v20  ;;  %v2884_v33 = vadd.f32 %v584_v21, %v321_v36  ;;  %v2887_v27 = vadd.f32 %v657_v23, %v2827_v31  ;;  %v553_v3 = vadd.f32 %v2817_v24, %v317_v30 }
 0x114   : > { %v586_v32 = vpop.f32.mrf.mxu0  ;;  %v659_v55 = vpop.f32.mrf.mxu1  ;;  %v555_v23 = vadd.f32 %v2823_v28, %v321_v36 }
 0x115   : > { %3399 = vst [vmem:[#allocation22_spill] sm:$0xff] %v2884_v33  ;;  %3400 = vst [vmem:[#allocation23_spill] sm:$0xff] %v2887_v27  ;;  %v2889_v6 = vadd.f32 %v586_v32, %v317_v30  ;;  %v2892_v56 = vadd.f32 %v659_v55, %v2821_v26  ;;  %v628_v30 = vadd.f32 %v2825_v29, %v2827_v31 }
 0x116   : > { %v588_v5 = vpop.f32.mrf.mxu0  ;;  %v661_v16 = vpop.f32.mrf.mxu1 }
 0x117   : > { %3401 = vst [vmem:[#allocation24_spill] sm:$0xff] %v2889_v6  ;;  %3402 = vst [vmem:[#allocation25_spill] sm:$0xff] %v2892_v56  ;;  %v2895_v17 = vadd.f32 %v588_v5, %v321_v36  ;;  %v2898_v20 = vadd.f32 %v661_v16, %v2827_v31  ;;  %v626_v16 = vadd.f32 %v2819_v25, %v2821_v26 }
 0x118   : > { %v931_v21 = vpop.f32.mrf.mxu0  ;;  %v972_v33 = vpop.f32.mrf.mxu1 }
 0x119   : > { %v979_v27 = vadd.f32 %v931_v21, %v553_v3  ;;  %v981_v36 = vadd.f32 %v972_v33, %v626_v16  ;;  %v3403_v16 = vmov 0  }
 0x11a   : > { %v933_v22 = vpop.f32.mrf.mxu0  ;;  %v974_v32 = vpop.f32.mrf.mxu1 }
 0x11b   : > { %v2055_v6 = vmul.f32 -1.442695, %v979_v27  ;;  %v980_v15 = vadd.f32 %v933_v22, %v555_v23  ;;  %v982_v5 = vadd.f32 %v974_v32, %v628_v30 }
 0x11c   : > { %v935_v55 = vpop.f32.mrf.mxu0  ;;  %v976_v56 = vpop.f32.mrf.mxu1 }
 0x11d   : > { %2210 = vpow2.f32 %v2055_v6  ;;  %v2056_v19 = vmul.f32 -1.442695, %v980_v15  ;;  %v2057_v28 = vmul.f32 -1.442695, %v982_v5  ;;  %v1012_v56 = vpop.permute.xlu0 %1011 }
 0x11e   : > { %v936_v18 = vpop.f32.mrf.mxu0  ;;  %v977_v24 = vpop.f32.mrf.mxu1  ;;  %vm1013_vm4 = vcmp.eq.s32.totalorder %v1012_v56, 1 }
 0x11f   : > { %2212 = vpow2.f32 %v2056_v19  ;;  %v731_v19 = vld [vmem:[#allocation4] sm:$0xff] }
 0x120   : > { %2214 = vpow2.f32 %v2057_v28  ;;  %v1385_v28 = vstv %s1384_s18 }
 0x121   : > { %vm1386_vm6 = vcmp.lt.s32.totalorder %v1385_v28, %v2669_v57 }
 0x12a   : > { %v2211_v3 = vpop.eup %2210 }
 0x12b   : > { %v986_v21 = vadd.f32 1.0, %v2211_v3 }
 0x12c   : > { %v2213_v27 = vpop.eup %2212 }
 0x12d   : > { %2216 = vrcp.f32 %v986_v21  ;;  %v992_v22 = vadd.f32 1.0, %v2213_v27  ;;  %v2215_v15 = vpop.eup %2214  ;;  %v1387_v21 = vsel %vm1386_vm6, 1, %v3403_v16  ;;  %v1889_v27 = vstv %s1888_s24 }
 0x12e   : > { %2218 = vtanh.f32 %v981_v36  ;;  %v999_v31 = vadd.f32 1.0, %v2215_v15  ;;  %v1637_v36 = vstv %s1636_s23  ;;  %vm1890_vm8 = vcmp.lt.s32.totalorder %v1889_v27, %v2669_v57 }
 0x12f   : > { %2220 = vrcp.f32 %v992_v22  ;;  %vm1638_vm7 = vcmp.lt.s32.totalorder %v1637_v36, %v2669_v57  ;;  %v1891_v15 = vsel %vm1890_vm8, 1, %v3403_v16 }
 0x130   : > { %2222 = vrcp.f32 %v999_v31  ;;  %v1639_v22 = vsel %vm1638_vm7, 1, %v3403_v16 }
 0x13a   : > { %v2217_v18 = vpop.eup %2216 }
 0x13b   : > { %v2219_v6 = vpop.eup %2218 }
 0x13c   : > { %v2221_v29 = vpop.eup %2220  ;;  %v1003_v32 = vmul.f32 %v2219_v6, %v2217_v18 }
 0x13d   : > { %v1002_v23 = vmul.f32 %v2221_v29, %v731_v19  ;;  %v2223_v33 = vpop.eup %2222 }
 0x13f   : > { %v1004_v25 = vadd.f32 %v1003_v32, %v1002_v23 }
 0x141   : > { %2224 = vtanh.f32 %v1004_v25  ;;  %v2905_v26 = vsel %vm1013_vm4, %v1004_v25, %v731_v19 }
 0x14e   : > { %v2225_v55 = vpop.eup %2224 }
 0x14f   : > { %v1006_v24 = vmul.f32 %v2225_v55, %v2223_v33 }
 0x151   : > { %v2908_v30 = vsel %vm1013_vm4, %v1006_v24, %v2765_v14  ;;  %v1259_v14 = vstv %s1258_s17 }
 0x152   : > { %v1021_v5 = vpack.c.bf16 %v2908_v30, %v2908_v30  ;;  %vm1260_vm5 = vcmp.lt.s32.totalorder %v1259_v14, %v2669_v57 }
 0x153   : > { %v1261_v3 = vsel %vm1260_vm5, 1, %v3403_v16 }
 0x154   : > { %1055 = vmatmul.mubr.bf16.vlgmr.msra.gmra.mxu0 %v1021_v5  ;;  %1096 = vmatmul.mubr.bf16.vlgmr.msra.gmra.mxu1 %v1021_v5 }
 0x155   : > { %1149 = vmatpush1.bf16.msra.mxu0 %v2567_v37  ;;  %1190 = vmatpush1.bf16.msra.mxu1 %v2572_v38 }
 0x156   : > { %1150 = vmatprep.subr.bf16.mxu0 %v2579_v39  ;;  %1191 = vmatprep.subr.bf16.mxu1 %v2584_v40 }
 0x157   : > { %1180 = vmatprep.mubr.bf16.mxu0 %v3403_v16  ;;  %1221 = vmatprep.mubr.bf16.mxu1 %v3403_v16 }
 0x158   : > { %1263 = vperm.xlu1 %2109, %v1261_v3  }
 0x159   : > { %1151 = vmatpush1.bf16.msra.mxu0 %v2589_v41  ;;  %1192 = vmatpush1.bf16.msra.mxu1 %v2596_v42 }
 0x15a   : > { %1152 = vmatprep.subr.bf16.mxu0 %v2603_v43  ;;  %1193 = vmatprep.subr.bf16.mxu1 %v2608_v44 }
 0x15c   : > { %1389 = vperm.xlu1 %2109, %v1387_v21  }
 0x15d   : > { %1153 = vmatpush1.bf16.msra.mxu0 %v2616_v46  ;;  %1194 = vmatpush1.bf16.msra.mxu1 %v2621_v47 }
 0x15e   : > { %1154 = vmatprep.subr.bf16.mxu0 %v2628_v48  ;;  %1195 = vmatprep.subr.bf16.mxu1 %v2635_v49 }
 0x160   : > { %1641 = vperm.xlu1 %2109, %v1639_v22  }
 0x161   : > { %1155 = vmatpush1.bf16.msra.mxu0 %v2640_v50  ;;  %1196 = vmatpush1.bf16.msra.mxu1 %v2645_v51 }
 0x162   : > { %1156 = vmatprep.subr.bf16.mxu0 %v2653_v52  ;;  %1197 = vmatprep.subr.bf16.mxu1 %v2660_v53 }
 0x164   : > { %1893 = vperm.xlu1 %2109, %v1891_v15  }
 0x165   : > { %1157 = vmatpush1.bf16.msra.mxu0 %v2676_v58  ;;  %1198 = vmatpush1.bf16.msra.mxu1 %v2681_v59 }
 0x166   : > { %1158 = vmatprep.subr.bf16.mxu0 %v2689_v60  ;;  %1199 = vmatprep.subr.bf16.mxu1 %v2694_v61 }
 0x169   : > { %1159 = vmatpush1.bf16.msra.mxu0 %v2704_v63  ;;  %1200 = vmatpush1.bf16.msra.mxu1 %v2709_v0 }
 0x16a   : > { %1160 = vmatprep.subr.bf16.mxu0 %v2717_v2  ;;  %1201 = vmatprep.subr.bf16.mxu1 %v2722_v4 }
 0x16d   : > { %1161 = vmatpush1.bf16.msra.mxu0 %v2732_v7  ;;  %1202 = vmatpush1.bf16.msra.mxu1 %v2737_v8 }
 0x16e   : > { %1162 = vmatprep.subr.bf16.mxu0 %v2745_v9  ;;  %1203 = vmatprep.subr.bf16.mxu1 %v2750_v10 }
 0x171   : > { %1163 = vmatpush1.bf16.msra.mxu0 %v2758_v12  ;;  %1204 = vmatpush1.bf16.msra.mxu1 %v2763_v13 }
 0x172   : > { %1274 = vmatprep.subr.bf16.mxu0 %v2556_v34  ;;  %1315 = vmatprep.subr.bf16.mxu1 %v2561_v35 }
 0x214   : > { %v1056_v18 = vpop.f32.mrf.mxu0  ;;  %v1097_v19 = vpop.f32.mrf.mxu1 }
 0x215   : > { %v1104_v6 = vadd.f32 %v1056_v18, %v2829_v45  ;;  %v1106_v5 = vadd.f32 %v1097_v19, %v2832_v54 }
 0x216   : > { %v1058_v56 = vpop.f32.mrf.mxu0  ;;  %v1099_v29 = vpop.f32.mrf.mxu1 }
 0x217   : > { %v2058_v31 = vmul.f32 -1.442695, %v1104_v6  ;;  %v1105_v23 = vadd.f32 %v1058_v56, %v2834_v62  ;;  %v1107_v57 = vadd.f32 %v1099_v29, %v2837_v1  ;;  %v1138_v1 = vpop.permute.xlu0 %1137 }
 0x218   : > { %v1060_v32 = vpop.f32.mrf.mxu0  ;;  %v1101_v25 = vpop.f32.mrf.mxu1  ;;  %vm1139_vm9 = vcmp.eq.s32.totalorder %v1138_v1, 1 }
 0x219   : > { %2226 = vpow2.f32 %v2058_v31  ;;  %v2059_v33 = vmul.f32 -1.442695, %v1105_v23  ;;  %v2060_v14 = vmul.f32 -1.442695, %v1107_v57  ;;  %v3404_v57 = vld [vmem:[#allocation6_spill] sm:$0xff] }
 0x21a   : > { %v1061_v55 = vpop.f32.mrf.mxu0  ;;  %v1102_v24 = vpop.f32.mrf.mxu1 }
 0x21b   : > { %2228 = vpow2.f32 %v2059_v33 }
 0x21c   : > { %2230 = vtanh.f32 %v1106_v5 }
 0x21d   : > { %2232 = vpow2.f32 %v2060_v14 }
 0x226   : > { %v2227_v28 = vpop.eup %2226 }
 0x227   : > { %v1111_v3 = vadd.f32 1.0, %v2227_v28 }
 0x228   : > { %v2229_v45 = vpop.eup %2228 }
 0x229   : > { %2234 = vrcp.f32 %v1111_v3  ;;  %v1117_v36 = vadd.f32 1.0, %v2229_v45  ;;  %v2231_v62 = vpop.eup %2230 }
 0x22a   : > { %v2233_v21 = vpop.eup %2232 }
 0x22b   : > { %2236 = vrcp.f32 %v1117_v36  ;;  %v1124_v18 = vadd.f32 1.0, %v2233_v21 }
 0x22d   : > { %2238 = vrcp.f32 %v1124_v18 }
 0x236   : > { %v2235_v27 = vpop.eup %2234 }
 0x237   : > { %v1128_v22 = vmul.f32 %v2235_v27, %v2231_v62  ;;  %v3405_v62 = vld [vmem:[#allocation7_spill] sm:$0xff]  ;;  %v3406_v27 = vld [vmem:[#allocation5_spill] sm:$0xff] }
 0x238   : > { %v2237_v15 = vpop.eup %2236 }
 0x239   : > { %v1127_v6 = vmul.f32 %v2237_v15, %v2905_v26 }
 0x23a   : > { %v2239_v19 = vpop.eup %2238 }
 0x23b   : > { %v1129_v56 = vadd.f32 %v1128_v22, %v1127_v6 }
 0x23d   : > { %2240 = vtanh.f32 %v1129_v56  ;;  %v2964_v54 = vsel %vm1139_vm9, %v1129_v56, %v2905_v26 }
 0x24a   : > { %v2241_v29 = vpop.eup %2240 }
 0x24b   : > { %v1131_v31 = vmul.f32 %v2241_v29, %v2239_v19 }
 0x24d   : > { %v2967_v23 = vsel %vm1139_vm9, %v1131_v31, %v2908_v30  ;;  %v1264_v31 = vpop.permute.xlu1 %1263 }
 0x24e   : > { %v1147_v32 = vpack.c.bf16 %v2967_v23, %v2967_v23  ;;  %vm1265_vm10 = vcmp.eq.s32.totalorder %v1264_v31, 1 }
 0x250   : > { %1181 = vmatmul.mubr.bf16.vlgmr.msra.gmra.mxu0 %v1147_v32  ;;  %1222 = vmatmul.mubr.bf16.vlgmr.msra.gmra.mxu1 %v1147_v32 }
 0x251   : > { %1275 = vmatpush1.bf16.msra.mxu0 %v2567_v37  ;;  %1316 = vmatpush1.bf16.msra.mxu1 %v2572_v38 }
 0x252   : > { %1276 = vmatprep.subr.bf16.mxu0 %v2579_v39  ;;  %1317 = vmatprep.subr.bf16.mxu1 %v2584_v40 }
 0x253   : > { %1306 = vmatprep.mubr.bf16.mxu0 %v3403_v16  ;;  %1347 = vmatprep.mubr.bf16.mxu1 %v3403_v16 }
 0x255   : > { %1277 = vmatpush1.bf16.msra.mxu0 %v2589_v41  ;;  %1318 = vmatpush1.bf16.msra.mxu1 %v2596_v42 }
 0x256   : > { %1278 = vmatprep.subr.bf16.mxu0 %v2603_v43  ;;  %1319 = vmatprep.subr.bf16.mxu1 %v2608_v44 }
 0x259   : > { %1279 = vmatpush1.bf16.msra.mxu0 %v2616_v46  ;;  %1320 = vmatpush1.bf16.msra.mxu1 %v2621_v47 }
 0x25a   : > { %1280 = vmatprep.subr.bf16.mxu0 %v2628_v48  ;;  %1321 = vmatprep.subr.bf16.mxu1 %v2635_v49 }
 0x25d   : > { %1281 = vmatpush1.bf16.msra.mxu0 %v2640_v50  ;;  %1322 = vmatpush1.bf16.msra.mxu1 %v2645_v51 }
 0x25e   : > { %1282 = vmatprep.subr.bf16.mxu0 %v2653_v52  ;;  %1323 = vmatprep.subr.bf16.mxu1 %v2660_v53 }
 0x261   : > { %1283 = vmatpush1.bf16.msra.mxu0 %v2676_v58  ;;  %1324 = vmatpush1.bf16.msra.mxu1 %v2681_v59 }
 0x262   : > { %1284 = vmatprep.subr.bf16.mxu0 %v2689_v60  ;;  %1325 = vmatprep.subr.bf16.mxu1 %v2694_v61 }
 0x265   : > { %1285 = vmatpush1.bf16.msra.mxu0 %v2704_v63  ;;  %1326 = vmatpush1.bf16.msra.mxu1 %v2709_v0 }
 0x266   : > { %1286 = vmatprep.subr.bf16.mxu0 %v2717_v2  ;;  %1327 = vmatprep.subr.bf16.mxu1 %v2722_v4 }
 0x269   : > { %1287 = vmatpush1.bf16.msra.mxu0 %v2732_v7  ;;  %1328 = vmatpush1.bf16.msra.mxu1 %v2737_v8 }
 0x26a   : > { %1288 = vmatprep.subr.bf16.mxu0 %v2745_v9  ;;  %1329 = vmatprep.subr.bf16.mxu1 %v2750_v10 }
 0x26d   : > { %1289 = vmatpush1.bf16.msra.mxu0 %v2758_v12  ;;  %1330 = vmatpush1.bf16.msra.mxu1 %v2763_v13 }
 0x26e   : > { %1400 = vmatprep.subr.bf16.mxu0 %v2556_v34  ;;  %1441 = vmatprep.subr.bf16.mxu1 %v2561_v35 }
 0x310   : > { %v1182_v26 = vpop.f32.mrf.mxu0  ;;  %v1223_v30 = vpop.f32.mrf.mxu1 }
 0x311   : > { %v1230_v25 = vadd.f32 %v1182_v26, %v2839_v11  ;;  %v1232_v22 = vadd.f32 %v1223_v30, %v3406_v27 }
 0x312   : > { %v1184_v33 = vpop.f32.mrf.mxu0  ;;  %v1225_v55 = vpop.f32.mrf.mxu1 }
 0x313   : > { %v2061_v24 = vmul.f32 -1.442695, %v1230_v25  ;;  %v1231_v5 = vadd.f32 %v1184_v33, %v3404_v57  ;;  %v1233_v21 = vadd.f32 %v1225_v55, %v3405_v62 }
 0x314   : > { %v1186_v14 = vpop.f32.mrf.mxu0  ;;  %v1227_v28 = vpop.f32.mrf.mxu1 }
 0x315   : > { %2242 = vpow2.f32 %v2061_v24  ;;  %v2062_v3 = vmul.f32 -1.442695, %v1231_v5  ;;  %v2063_v15 = vmul.f32 -1.442695, %v1233_v21 }
 0x316   : > { %v1187_v45 = vpop.f32.mrf.mxu0  ;;  %v1228_v36 = vpop.f32.mrf.mxu1 }
 0x317   : > { %2244 = vpow2.f32 %v2062_v3  ;;  %v3409_v3 = vld [vmem:[#allocation11_spill] sm:$0xff]  ;;  %v3410_v45 = vld [vmem:[#allocation9_spill] sm:$0xff] }
 0x318   : > { %2246 = vtanh.f32 %v1232_v22 }
 0x319   : > { %2248 = vpow2.f32 %v2063_v15 }
 0x322   : > { %v2243_v18 = vpop.eup %2242 }
 0x323   : > { %v1237_v6 = vadd.f32 1.0, %v2243_v18 }
 0x324   : > { %v2245_v11 = vpop.eup %2244 }
 0x325   : > { %2250 = vrcp.f32 %v1237_v6  ;;  %v1243_v1 = vadd.f32 1.0, %v2245_v11  ;;  %v2247_v56 = vpop.eup %2246 }
 0x326   : > { %v2249_v19 = vpop.eup %2248 }
 0x327   : > { %2252 = vrcp.f32 %v1243_v1  ;;  %v1250_v25 = vadd.f32 1.0, %v2249_v19 }
 0x329   : > { %2254 = vrcp.f32 %v1250_v25 }
 0x332   : > { %v2251_v29 = vpop.eup %2250 }
 0x333   : > { %v1254_v32 = vmul.f32 %v2251_v29, %v2247_v56  ;;  %v1390_v29 = vpop.permute.xlu1 %1389 }
 0x334   : > { %v2253_v26 = vpop.eup %2252  ;;  %vm1391_vm11 = vcmp.eq.s32.totalorder %v1390_v29, 1  ;;  %v3205_v29 = vld [vmem:[%s3377_s3 + $0x88] ss:$16 sps:$4 sm:$0xff]  }
 0x335   : > { %v1253_v33 = vmul.f32 %v2253_v26, %v2964_v54 }
 0x336   : > { %v2255_v24 = vpop.eup %2254 }
 0x337   : > { %v1255_v30 = vadd.f32 %v1254_v32, %v1253_v33 }
 0x339   : > { %2256 = vtanh.f32 %v1255_v30  ;;  %v3011_v55 = vsel %vm1265_vm10, %v1255_v30, %v2964_v54 }
 0x346   : > { %v2257_v57 = vpop.eup %2256 }
 0x347   : > { %v1257_v5 = vmul.f32 %v2257_v57, %v2255_v24  ;;  %v3068_v57 = vld [vmem:[%s3377_s3 + $0xe0] ss:$16 sps:$4 sm:$0xff]  }
 0x349   : > { %v3014_v14 = vsel %vm1265_vm10, %v1257_v5, %v2967_v23  ;;  %v3080_v5 = vld [vmem:[%s3377_s3 + $0xc4] ss:$16 sps:$4 sm:$0xff]  }
 0x34a   : > { %v1273_v28 = vpack.c.bf16 %v3014_v14, %v3014_v14 }
 0x34c   : > { %1307 = vmatmul.mubr.bf16.vlgmr.msra.gmra.mxu0 %v1273_v28  ;;  %1348 = vmatmul.mubr.bf16.vlgmr.msra.gmra.mxu1 %v1273_v28  ;;  %v3094_v28 = vld [vmem:[%s3377_s3 + $0xc0] ss:$16 sps:$4 sm:$0xff]  }
 0x34d   : > { %1401 = vmatpush1.bf16.msra.mxu0 %v2567_v37  ;;  %1442 = vmatpush1.bf16.msra.mxu1 %v2572_v38 }
 0x34e   : > { %1402 = vmatprep.subr.bf16.mxu0 %v2579_v39  ;;  %1443 = vmatprep.subr.bf16.mxu1 %v2584_v40  ;;  %v3407_v39 = vld [vmem:[#allocation8_spill] sm:$0xff] }
 0x34f   : > { %1432 = vmatprep.mubr.bf16.mxu0 %v3403_v16  ;;  %1473 = vmatprep.mubr.bf16.mxu1 %v3403_v16 }
 0x351   : > { %1403 = vmatpush1.bf16.msra.mxu0 %v2589_v41  ;;  %1444 = vmatpush1.bf16.msra.mxu1 %v2596_v42 }
 0x352   : > { %1404 = vmatprep.subr.bf16.mxu0 %v2603_v43  ;;  %1445 = vmatprep.subr.bf16.mxu1 %v2608_v44  ;;  %v3408_v44 = vld [vmem:[#allocation10_spill] sm:$0xff] }
 0x355   : > { %1405 = vmatpush1.bf16.msra.mxu0 %v2616_v46  ;;  %1446 = vmatpush1.bf16.msra.mxu1 %v2621_v47 }
 0x356   : > { %1406 = vmatprep.subr.bf16.mxu0 %v2628_v48  ;;  %1447 = vmatprep.subr.bf16.mxu1 %v2635_v49 }
 0x359   : > { %1407 = vmatpush1.bf16.msra.mxu0 %v2640_v50  ;;  %1448 = vmatpush1.bf16.msra.mxu1 %v2645_v51 }
 0x35a   : > { %1408 = vmatprep.subr.bf16.mxu0 %v2653_v52  ;;  %1449 = vmatprep.subr.bf16.mxu1 %v2660_v53 }
 0x35d   : > { %1409 = vmatpush1.bf16.msra.mxu0 %v2676_v58  ;;  %1450 = vmatpush1.bf16.msra.mxu1 %v2681_v59 }
 0x35e   : > { %1410 = vmatprep.subr.bf16.mxu0 %v2689_v60  ;;  %1451 = vmatprep.subr.bf16.mxu1 %v2694_v61 }
 0x361   : > { %1411 = vmatpush1.bf16.msra.mxu0 %v2704_v63  ;;  %1452 = vmatpush1.bf16.msra.mxu1 %v2709_v0 }
 0x362   : > { %1412 = vmatprep.subr.bf16.mxu0 %v2717_v2  ;;  %1453 = vmatprep.subr.bf16.mxu1 %v2722_v4 }
 0x365   : > { %1413 = vmatpush1.bf16.msra.mxu0 %v2732_v7  ;;  %1454 = vmatpush1.bf16.msra.mxu1 %v2737_v8 }
 0x366   : > { %1414 = vmatprep.subr.bf16.mxu0 %v2745_v9  ;;  %1455 = vmatprep.subr.bf16.mxu1 %v2750_v10 }
 0x369   : > { %1415 = vmatpush1.bf16.msra.mxu0 %v2758_v12  ;;  %1456 = vmatpush1.bf16.msra.mxu1 %v2763_v13 }
 0x36a   : > { %1526 = vmatprep.subr.bf16.mxu0 %v2556_v34  ;;  %1567 = vmatprep.subr.bf16.mxu1 %v2561_v35 }
 0x40c   : > { %v1308_v37 = vpop.f32.mrf.mxu0  ;;  %v1349_v38 = vpop.f32.mrf.mxu1 }
 0x40d   : > { %v1356_v40 = vadd.f32 %v1308_v37, %v3407_v39  ;;  %v1358_v35 = vadd.f32 %v1349_v38, %v3410_v45  ;;  %v3100_v37 = vld [vmem:[%s3377_s3 + $0xc8] ss:$16 sps:$4 sm:$0xff]   ;;  %v3106_v38 = vld [vmem:[%s3377_s3 + $0xa4] ss:$16 sps:$4 sm:$0xff]   ;;  %v3112_v39 = vld [vmem:[%s3377_s3 + $0xac] ss:$16 sps:$4 sm:$0xff]  }
 0x40e   : > { %v1310_v41 = vpop.f32.mrf.mxu0  ;;  %v1351_v42 = vpop.f32.mrf.mxu1 }
 0x40f   : > { %v2064_v43 = vmul.f32 -1.442695, %v1356_v40  ;;  %v1357_v46 = vadd.f32 %v1310_v41, %v3408_v44  ;;  %v1359_v34 = vadd.f32 %v1351_v42, %v3409_v3  ;;  %v3118_v40 = vld [vmem:[%s3377_s3 + $0xa0] ss:$16 sps:$4 sm:$0xff]   ;;  %v3124_v41 = vld [vmem:[%s3377_s3 + $0xa8] ss:$16 sps:$4 sm:$0xff]  }
 0x410   : > { %v1312_v47 = vpop.f32.mrf.mxu0  ;;  %v1353_v48 = vpop.f32.mrf.mxu1  ;;  %v3130_v42 = vld [vmem:[%s3377_s3 + $0x84] ss:$16 sps:$4 sm:$0xff]  }
 0x411   : > { %2258 = vpow2.f32 %v2064_v43  ;;  %v2065_v49 = vmul.f32 -1.442695, %v1357_v46  ;;  %v2066_v36 = vmul.f32 -1.442695, %v1359_v34  ;;  %v3136_v43 = vld [vmem:[%s3377_s3 + $0x8c] ss:$16 sps:$4 sm:$0xff]  }
 0x412   : > { %v1313_v54 = vpop.f32.mrf.mxu0  ;;  %v1354_v23 = vpop.f32.mrf.mxu1  ;;  %v3414_v44 = vld [vmem:[#allocation13_spill] sm:$0xff] }
 0x413   : > { %2260 = vpow2.f32 %v2065_v49 }
 0x414   : > { %2262 = vtanh.f32 %v1358_v35 }
 0x415   : > { %2264 = vpow2.f32 %v2066_v36 }
 0x41e   : > { %v2259_v62 = vpop.eup %2258 }
 0x41f   : > { %v1363_v21 = vadd.f32 1.0, %v2259_v62 }
 0x420   : > { %v2261_v27 = vpop.eup %2260 }
 0x421   : > { %2266 = vrcp.f32 %v1363_v21  ;;  %v1369_v22 = vadd.f32 1.0, %v2261_v27  ;;  %v2263_v15 = vpop.eup %2262  ;;  %v1516_v27 = vpop.permute.xlu0 %1515 }
 0x422   : > { %v2265_v18 = vpop.eup %2264  ;;  %vm1517_vm12 = vcmp.eq.s32.totalorder %v1516_v27, 1 }
 0x423   : > { %2268 = vrcp.f32 %v1369_v22  ;;  %v1376_v56 = vadd.f32 1.0, %v2265_v18 }
 0x425   : > { %2270 = vrcp.f32 %v1376_v56 }
 0x42e   : > { %v2267_v6 = vpop.eup %2266 }
 0x42f   : > { %v1380_v11 = vmul.f32 %v2267_v6, %v2263_v15 }
 0x430   : > { %v2269_v1 = vpop.eup %2268 }
 0x431   : > { %v1379_v19 = vmul.f32 %v2269_v1, %v3011_v55 }
 0x432   : > { %v2271_v26 = vpop.eup %2270 }
 0x433   : > { %v1381_v31 = vadd.f32 %v1380_v11, %v1379_v19  ;;  %v3199_v19 = vld [vmem:[%s3377_s3 + $0x80] ss:$16 sps:$4 sm:$0xff]  }
 0x435   : > { %2272 = vtanh.f32 %v1381_v31  ;;  %v3058_v32 = vsel %vm1391_vm11, %v1381_v31, %v3011_v55  ;;  %v3074_v55 = vld [vmem:[%s3377_s3 + $0xe8] ss:$16 sps:$4 sm:$0xff]   ;;  %v3211_v31 = vld [vmem:[%s3377_s3 + $0x64] ss:$16 sps:$4 sm:$0xff]  }
 0x442   : > { %v2273_v25 = vpop.eup %2272 }
 0x443   : > { %v1383_v33 = vmul.f32 %v2273_v25, %v2271_v26  ;;  %v3223_v26 = vld [vmem:[%s3377_s3 + $0x60] ss:$16 sps:$4 sm:$0xff]   ;;  %v3229_v25 = vld [vmem:[%s3377_s3 + $0x68] ss:$16 sps:$4 sm:$0xff]  }
 0x445   : > { %v3061_v30 = vsel %vm1391_vm11, %v1383_v33, %v3014_v14  ;;  %v3086_v14 = vld [vmem:[%s3377_s3 + $0xcc] ss:$16 sps:$4 sm:$0xff]   ;;  %v3235_v33 = vld [vmem:[%s3377_s3 + $0x44] ss:$16 sps:$4 sm:$0xff]  }
 0x446   : > { %v1399_v24 = vpack.c.bf16 %v3061_v30, %v3061_v30 }
 0x448   : > { %1433 = vmatmul.mubr.bf16.vlgmr.msra.gmra.mxu0 %v1399_v24  ;;  %1474 = vmatmul.mubr.bf16.vlgmr.msra.gmra.mxu1 %v1399_v24  ;;  %v3247_v24 = vld [vmem:[%s3377_s3 + $0x40] ss:$16 sps:$4 sm:$0xff]  }
 0x449   : > { %1527 = vmatpush1.bf16.msra.mxu0 %v3068_v57  ;;  %1568 = vmatpush1.bf16.msra.mxu1 %v3074_v55 }
 0x44a   : > { %1528 = vmatprep.subr.bf16.mxu0 %v3080_v5  ;;  %1569 = vmatprep.subr.bf16.mxu1 %v3086_v14 }
 0x44b   : > { %1558 = vmatprep.mubr.bf16.mxu0 %v3403_v16  ;;  %1599 = vmatprep.mubr.bf16.mxu1 %v3403_v16 }
 0x44d   : > { %1529 = vmatpush1.bf16.msra.mxu0 %v3094_v28  ;;  %1570 = vmatpush1.bf16.msra.mxu1 %v3100_v37 }
 0x44e   : > { %1530 = vmatprep.subr.bf16.mxu0 %v3106_v38  ;;  %1571 = vmatprep.subr.bf16.mxu1 %v3112_v39 }
 0x451   : > { %1531 = vmatpush1.bf16.msra.mxu0 %v3118_v40  ;;  %1572 = vmatpush1.bf16.msra.mxu1 %v3124_v41 }
 0x452   : > { %1532 = vmatprep.subr.bf16.mxu0 %v3130_v42  ;;  %1573 = vmatprep.subr.bf16.mxu1 %v3136_v43 }
 0x455   : > { %1533 = vmatpush1.bf16.msra.mxu0 %v2640_v50  ;;  %1574 = vmatpush1.bf16.msra.mxu1 %v2645_v51  ;;  %v3160_v50 = vld [vmem:[%s3377_s3 + $0xe4] ss:$16 sps:$4 sm:$0xff]   ;;  %v3166_v51 = vld [vmem:[%s3377_s3 + $0xec] ss:$16 sps:$4 sm:$0xff]  }
 0x456   : > { %1534 = vmatprep.subr.bf16.mxu0 %v2653_v52  ;;  %1575 = vmatprep.subr.bf16.mxu1 %v2660_v53 }
 0x459   : > { %1535 = vmatpush1.bf16.msra.mxu0 %v2676_v58  ;;  %1576 = vmatpush1.bf16.msra.mxu1 %v2681_v59  ;;  %v3411_v58 = vld [vmem:[#allocation12_spill] sm:$0xff] }
 0x45a   : > { %1536 = vmatprep.subr.bf16.mxu0 %v2689_v60  ;;  %1577 = vmatprep.subr.bf16.mxu1 %v2694_v61 }
 0x45d   : > { %1537 = vmatpush1.bf16.msra.mxu0 %v2704_v63  ;;  %1578 = vmatpush1.bf16.msra.mxu1 %v2709_v0  ;;  %v3412_v0 = vld [vmem:[#allocation14_spill] sm:$0xff] }
 0x45e   : > { %1538 = vmatprep.subr.bf16.mxu0 %v2717_v2  ;;  %1579 = vmatprep.subr.bf16.mxu1 %v2722_v4 }
 0x461   : > { %1539 = vmatpush1.bf16.msra.mxu0 %v2732_v7  ;;  %1580 = vmatpush1.bf16.msra.mxu1 %v2737_v8 }
 0x462   : > { %1540 = vmatprep.subr.bf16.mxu0 %v2745_v9  ;;  %1581 = vmatprep.subr.bf16.mxu1 %v2750_v10 }
 0x465   : > { %1541 = vmatpush1.bf16.msra.mxu0 %v2758_v12  ;;  %1582 = vmatpush1.bf16.msra.mxu1 %v2763_v13  ;;  %v3413_v12 = vld [vmem:[#allocation15_spill] sm:$0xff] }
 0x466   : > { %1652 = vmatprep.subr.bf16.mxu0 %v3160_v50  ;;  %1693 = vmatprep.subr.bf16.mxu1 %v3166_v51 }
 0x508   : > { %v1434_v52 = vpop.f32.mrf.mxu0  ;;  %v1475_v53 = vpop.f32.mrf.mxu1 }
 0x509   : > { %v1482_v59 = vadd.f32 %v1434_v52, %v3411_v58  ;;  %v1484_v46 = vadd.f32 %v1475_v53, %v3414_v44  ;;  %v3253_v52 = vld [vmem:[%s3377_s3 + $0x48] ss:$16 sps:$4 sm:$0xff]   ;;  %v3259_v53 = vld [vmem:[%s3377_s3 + $0x24] ss:$16 sps:$4 sm:$0xff]   ;;  %v3265_v58 = vld [vmem:[%s3377_s3 + $0x2c] ss:$16 sps:$4 sm:$0xff]  }
 0x50a   : > { %v1436_v60 = vpop.f32.mrf.mxu0  ;;  %v1477_v61 = vpop.f32.mrf.mxu1  ;;  %v3416_v44 = vld [vmem:[#allocation18_spill] sm:$0xff] }
 0x50b   : > { %v2067_v63 = vmul.f32 -1.442695, %v1482_v59  ;;  %v1483_v2 = vadd.f32 %v1436_v60, %v3412_v0  ;;  %v1485_v13 = vadd.f32 %v1477_v61, %v3413_v12  ;;  %v3271_v59 = vld [vmem:[%s3377_s3 + $0x20] ss:$16 sps:$4 sm:$0xff]   ;;  %v3277_v60 = vld [vmem:[%s3377_s3 + $0x28] ss:$16 sps:$4 sm:$0xff]  }
 0x50c   : > { %v1438_v4 = vpop.f32.mrf.mxu0  ;;  %v1479_v7 = vpop.f32.mrf.mxu1  ;;  %v3283_v61 = vld [vmem:[%s3377_s3 + $0x4] ss:$16 sps:$4 sm:$0xff]   ;;  %v3295_v0 = vld [vmem:[%s3377_s3] ss:$16 sps:$4 sm:$0xff]  }
 0x50d   : > { %2274 = vpow2.f32 %v2067_v63  ;;  %v2068_v8 = vmul.f32 -1.442695, %v1483_v2  ;;  %v2069_v47 = vmul.f32 -1.442695, %v1485_v13  ;;  %v3289_v63 = vld [vmem:[%s3377_s3 + $0xc] ss:$16 sps:$4 sm:$0xff]  }
 0x50e   : > { %v1439_v9 = vpop.f32.mrf.mxu0  ;;  %v1480_v10 = vpop.f32.mrf.mxu1  ;;  %v3301_v2 = vld [vmem:[%s3377_s3 + $0x8] ss:$16 sps:$4 sm:$0xff]  }
 0x50f   : > { %2276 = vpow2.f32 %v2068_v8  ;;  %v3415_v8 = vld [vmem:[#allocation16_spill] sm:$0xff] }
 0x510   : > { %2278 = vtanh.f32 %v1484_v46 }
 0x511   : > { %2280 = vpow2.f32 %v2069_v47 }
 0x51a   : > { %v2275_v48 = vpop.eup %2274 }
 0x51b   : > { %v1489_v49 = vadd.f32 1.0, %v2275_v48 }
 0x51c   : > { %v2277_v54 = vpop.eup %2276 }
 0x51d   : > { %2282 = vrcp.f32 %v1489_v49  ;;  %v1495_v23 = vadd.f32 1.0, %v2277_v54  ;;  %v2279_v3 = vpop.eup %2278 }
 0x51e   : > { %v2281_v34 = vpop.eup %2280 }
 0x51f   : > { %2284 = vrcp.f32 %v1495_v23  ;;  %v1502_v62 = vadd.f32 1.0, %v2281_v34  ;;  %v3418_v34 = vld [vmem:[#allocation17_spill] sm:$0xff] }
 0x521   : > { %2286 = vrcp.f32 %v1502_v62 }
 0x52a   : > { %v2283_v45 = vpop.eup %2282 }
 0x52b   : > { %v1506_v35 = vmul.f32 %v2283_v45, %v2279_v3  ;;  %v3417_v3 = vld [vmem:[#allocation19_spill] sm:$0xff] }
 0x52c   : > { %v2285_v36 = vpop.eup %2284 }
 0x52d   : > { %v1505_v21 = vmul.f32 %v2285_v36, %v3058_v32 }
 0x52e   : > { %v2287_v18 = vpop.eup %2286 }
 0x52f   : > { %v1507_v22 = vadd.f32 %v1506_v35, %v1505_v21 }
 0x531   : > { %2288 = vtanh.f32 %v1507_v22  ;;  %v3175_v15 = vsel %vm1517_vm12, %v1507_v22, %v3058_v32  ;;  %v3217_v32 = vld [vmem:[%s3377_s3 + $0x6c] ss:$16 sps:$4 sm:$0xff]  }
 0x53e   : > { %v2289_v6 = vpop.eup %2288 }
 0x53f   : > { %v1509_v11 = vmul.f32 %v2289_v6, %v2287_v18 }
 0x541   : > { %v3178_v1 = vsel %vm1517_vm12, %v1509_v11, %v3061_v30  ;;  %v3241_v30 = vld [vmem:[%s3377_s3 + $0x4c] ss:$16 sps:$4 sm:$0xff]  }
 0x542   : > { %v1525_v56 = vpack.c.bf16 %v3178_v1, %v3178_v1 }
 0x544   : > { %1559 = vmatmul.mubr.bf16.vlgmr.msra.gmra.mxu0 %v1525_v56  ;;  %1600 = vmatmul.mubr.bf16.vlgmr.msra.gmra.mxu1 %v1525_v56 }
 0x545   : > { %1653 = vmatpush1.bf16.msra.mxu0 %v3068_v57  ;;  %1694 = vmatpush1.bf16.msra.mxu1 %v3074_v55 }
 0x546   : > { %1654 = vmatprep.subr.bf16.mxu0 %v3080_v5  ;;  %1695 = vmatprep.subr.bf16.mxu1 %v3086_v14 }
 0x547   : > { %1684 = vmatprep.mubr.bf16.mxu0 %v3403_v16  ;;  %1725 = vmatprep.mubr.bf16.mxu1 %v3403_v16 }
 0x549   : > { %1655 = vmatpush1.bf16.msra.mxu0 %v3094_v28  ;;  %1696 = vmatpush1.bf16.msra.mxu1 %v3100_v37 }
 0x54a   : > { %1656 = vmatprep.subr.bf16.mxu0 %v3106_v38  ;;  %1697 = vmatprep.subr.bf16.mxu1 %v3112_v39 }
 0x54d   : > { %1657 = vmatpush1.bf16.msra.mxu0 %v3118_v40  ;;  %1698 = vmatpush1.bf16.msra.mxu1 %v3124_v41 }
 0x54e   : > { %1658 = vmatprep.subr.bf16.mxu0 %v3130_v42  ;;  %1699 = vmatprep.subr.bf16.mxu1 %v3136_v43 }
 0x551   : > { %1659 = vmatpush1.bf16.msra.mxu0 %v3199_v19  ;;  %1700 = vmatpush1.bf16.msra.mxu1 %v3205_v29 }
 0x552   : > { %1660 = vmatprep.subr.bf16.mxu0 %v3211_v31  ;;  %1701 = vmatprep.subr.bf16.mxu1 %v3217_v32 }
 0x555   : > { %1661 = vmatpush1.bf16.msra.mxu0 %v3223_v26  ;;  %1702 = vmatpush1.bf16.msra.mxu1 %v3229_v25 }
 0x556   : > { %1662 = vmatprep.subr.bf16.mxu0 %v3235_v33  ;;  %1703 = vmatprep.subr.bf16.mxu1 %v3241_v30 }
 0x559   : > { %1663 = vmatpush1.bf16.msra.mxu0 %v3247_v24  ;;  %1704 = vmatpush1.bf16.msra.mxu1 %v3253_v52 }
 0x55a   : > { %1664 = vmatprep.subr.bf16.mxu0 %v3259_v53  ;;  %1705 = vmatprep.subr.bf16.mxu1 %v3265_v58 }
 0x55d   : > { %1665 = vmatpush1.bf16.msra.mxu0 %v3271_v59  ;;  %1706 = vmatpush1.bf16.msra.mxu1 %v3277_v60 }
 0x55e   : > { %1666 = vmatprep.subr.bf16.mxu0 %v3283_v61  ;;  %1707 = vmatprep.subr.bf16.mxu1 %v3289_v63 }
 0x561   : > { %1667 = vmatpush1.bf16.msra.mxu0 %v3295_v0  ;;  %1708 = vmatpush1.bf16.msra.mxu1 %v3301_v2 }
 0x562   : > { %1778 = vmatprep.subr.bf16.mxu0 %v3160_v50  ;;  %1819 = vmatprep.subr.bf16.mxu1 %v3166_v51 }
 0x604   : > { %v1560_v4 = vpop.f32.mrf.mxu0  ;;  %v1601_v7 = vpop.f32.mrf.mxu1 }
 0x605   : > { %v1608_v9 = vadd.f32 %v1560_v4, %v3415_v8  ;;  %v1610_v51 = vadd.f32 %v1601_v7, %v3418_v34  ;;  %v1642_v8 = vpop.permute.xlu1 %1641  ;;  %v3423_v34 = vld [vmem:[#allocation24_spill] sm:$0xff] }
 0x606   : > { %v1562_v10 = vpop.f32.mrf.mxu0  ;;  %v1603_v12 = vpop.f32.mrf.mxu1  ;;  %vm1643_vm13 = vcmp.eq.s32.totalorder %v1642_v8, 1 }
 0x607   : > { %v2070_v13 = vmul.f32 -1.442695, %v1608_v9  ;;  %v1609_v46 = vadd.f32 %v1562_v10, %v3416_v44  ;;  %v1611_v50 = vadd.f32 %v1603_v12, %v3417_v3 }
 0x608   : > { %v1564_v47 = vpop.f32.mrf.mxu0  ;;  %v1605_v48 = vpop.f32.mrf.mxu1 }
 0x609   : > { %2290 = vpow2.f32 %v2070_v13  ;;  %v2071_v49 = vmul.f32 -1.442695, %v1609_v46  ;;  %v2072_v45 = vmul.f32 -1.442695, %v1611_v50 }
 0x60a   : > { %v1565_v54 = vpop.f32.mrf.mxu0  ;;  %v1606_v23 = vpop.f32.mrf.mxu1 }
 0x60b   : > { %2292 = vpow2.f32 %v2071_v49 }
 0x60c   : > { %2294 = vtanh.f32 %v1610_v51 }
 0x60d   : > { %2296 = vpow2.f32 %v2072_v45 }
 0x616   : > { %v2291_v35 = vpop.eup %2290 }
 0x617   : > { %v1615_v36 = vadd.f32 1.0, %v2291_v35 }
 0x618   : > { %v2293_v62 = vpop.eup %2292 }
 0x619   : > { %2298 = vrcp.f32 %v1615_v36  ;;  %v1621_v21 = vadd.f32 1.0, %v2293_v62  ;;  %v2295_v27 = vpop.eup %2294 }
 0x61a   : > { %v2297_v22 = vpop.eup %2296 }
 0x61b   : > { %2300 = vrcp.f32 %v1621_v21  ;;  %v1628_v56 = vadd.f32 1.0, %v2297_v22 }
 0x61d   : > { %2302 = vrcp.f32 %v1628_v56  ;;  %v3424_v56 = vld [vmem:[#allocation25_spill] sm:$0xff] }
 0x626   : > { %v2299_v18 = vpop.eup %2298 }
 0x627   : > { %v1632_v6 = vmul.f32 %v2299_v18, %v2295_v27 }
 0x628   : > { %v2301_v11 = vpop.eup %2300 }
 0x629   : > { %v1631_v4 = vmul.f32 %v2301_v11, %v3175_v15 }
 0x62a   : > { %v2303_v10 = vpop.eup %2302 }
 0x62b   : > { %v1633_v9 = vadd.f32 %v1632_v6, %v1631_v4 }
 0x62d   : > { %2304 = vtanh.f32 %v1633_v9  ;;  %v3312_v7 = vsel %vm1643_vm13, %v1633_v9, %v3175_v15 }
 0x63a   : > { %v2305_v12 = vpop.eup %2304 }
 0x63b   : > { %v1635_v13 = vmul.f32 %v2305_v12, %v2303_v10 }
 0x63d   : > { %v3315_v44 = vsel %vm1643_vm13, %v1635_v13, %v3178_v1  ;;  %v3421_v1 = vld [vmem:[#allocation23_spill] sm:$0xff] }
 0x63e   : > { %v1651_v46 = vpack.c.bf16 %v3315_v44, %v3315_v44 }
 0x640   : > { %1685 = vmatmul.mubr.bf16.vlgmr.msra.gmra.mxu0 %v1651_v46  ;;  %1726 = vmatmul.mubr.bf16.vlgmr.msra.gmra.mxu1 %v1651_v46 }
 0x641   : > { %1779 = vmatpush1.bf16.msra.mxu0 %v3068_v57  ;;  %1820 = vmatpush1.bf16.msra.mxu1 %v3074_v55  ;;  %v3419_v55 = vld [vmem:[#allocation20_spill] sm:$0xff] }
 0x642   : > { %1780 = vmatprep.subr.bf16.mxu0 %v3080_v5  ;;  %1821 = vmatprep.subr.bf16.mxu1 %v3086_v14 }
 0x643   : > { %1810 = vmatprep.mubr.bf16.mxu0 %v3403_v16  ;;  %1851 = vmatprep.mubr.bf16.mxu1 %v3403_v16 }
 0x645   : > { %1781 = vmatpush1.bf16.msra.mxu0 %v3094_v28  ;;  %1822 = vmatpush1.bf16.msra.mxu1 %v3100_v37 }
 0x646   : > { %1782 = vmatprep.subr.bf16.mxu0 %v3106_v38  ;;  %1823 = vmatprep.subr.bf16.mxu1 %v3112_v39  ;;  %v3420_v38 = vld [vmem:[#allocation22_spill] sm:$0xff] }
 0x649   : > { %1783 = vmatpush1.bf16.msra.mxu0 %v3118_v40  ;;  %1824 = vmatpush1.bf16.msra.mxu1 %v3124_v41 }
 0x64a   : > { %1784 = vmatprep.subr.bf16.mxu0 %v3130_v42  ;;  %1825 = vmatprep.subr.bf16.mxu1 %v3136_v43 }
 0x64d   : > { %1785 = vmatpush1.bf16.msra.mxu0 %v3199_v19  ;;  %1826 = vmatpush1.bf16.msra.mxu1 %v3205_v29  ;;  %v3422_v29 = vld [vmem:[#allocation21_spill] sm:$0xff] }
 0x64e   : > { %1786 = vmatprep.subr.bf16.mxu0 %v3211_v31  ;;  %1827 = vmatprep.subr.bf16.mxu1 %v3217_v32 }
 0x651   : > { %1787 = vmatpush1.bf16.msra.mxu0 %v3223_v26  ;;  %1828 = vmatpush1.bf16.msra.mxu1 %v3229_v25 }
 0x652   : > { %1788 = vmatprep.subr.bf16.mxu0 %v3235_v33  ;;  %1829 = vmatprep.subr.bf16.mxu1 %v3241_v30 }
 0x655   : > { %1789 = vmatpush1.bf16.msra.mxu0 %v3247_v24  ;;  %1830 = vmatpush1.bf16.msra.mxu1 %v3253_v52 }
 0x656   : > { %1790 = vmatprep.subr.bf16.mxu0 %v3259_v53  ;;  %1831 = vmatprep.subr.bf16.mxu1 %v3265_v58 }
 0x659   : > { %1791 = vmatpush1.bf16.msra.mxu0 %v3271_v59  ;;  %1832 = vmatpush1.bf16.msra.mxu1 %v3277_v60 }
 0x65a   : > { %1792 = vmatprep.subr.bf16.mxu0 %v3283_v61  ;;  %1833 = vmatprep.subr.bf16.mxu1 %v3289_v63  ;;  %v1768_v61 = vpop.permute.xlu0 %1767 }
 0x65b   : > { %vm1769_vm14 = vcmp.eq.s32.totalorder %v1768_v61, 1 }
 0x65d   : > { %1793 = vmatpush1.bf16.msra.mxu0 %v3295_v0  ;;  %1834 = vmatpush1.bf16.msra.mxu1 %v3301_v2 }
 0x700   : > { %v1686_v16 = vpop.f32.mrf.mxu0  ;;  %v1727_v57 = vpop.f32.mrf.mxu1 }
 0x701   : > { %v1734_v5 = vadd.f32 %v1686_v16, %v3419_v55  ;;  %v1736_v31 = vadd.f32 %v1727_v57, %v3422_v29  ;;  %v1894_v55 = vpop.permute.xlu1 %1893 }
 0x702   : > { %v1688_v14 = vpop.f32.mrf.mxu0  ;;  %v1729_v28 = vpop.f32.mrf.mxu1  ;;  %vm1895_vm15 = vcmp.eq.s32.totalorder %v1894_v55, 1 }
 0x703   : > { %v2073_v37 = vmul.f32 -1.442695, %v1734_v5  ;;  %v1735_v39 = vadd.f32 %v1688_v14, %v3420_v38  ;;  %v1737_v19 = vadd.f32 %v1729_v28, %v3421_v1 }
 0x704   : > { %v1690_v40 = vpop.f32.mrf.mxu0  ;;  %v1731_v41 = vpop.f32.mrf.mxu1 }
 0x705   : > { %2306 = vpow2.f32 %v2073_v37  ;;  %v2074_v42 = vmul.f32 -1.442695, %v1735_v39  ;;  %v2075_v32 = vmul.f32 -1.442695, %v1737_v19 }
 0x706   : > { %v1691_v43 = vpop.f32.mrf.mxu0  ;;  %v1732_v15 = vpop.f32.mrf.mxu1 }
 0x707   : > { %2308 = vpow2.f32 %v2074_v42 }
 0x708   : > { %2310 = vtanh.f32 %v1736_v31 }
 0x709   : > { %2312 = vpow2.f32 %v2075_v32 }
 0x712   : > { %v2307_v26 = vpop.eup %2306 }
 0x713   : > { %v1741_v25 = vadd.f32 1.0, %v2307_v26 }
 0x714   : > { %v2309_v33 = vpop.eup %2308 }
 0x715   : > { %2314 = vrcp.f32 %v1741_v25  ;;  %v1747_v30 = vadd.f32 1.0, %v2309_v33  ;;  %v2311_v24 = vpop.eup %2310 }
 0x716   : > { %v2313_v52 = vpop.eup %2312 }
 0x717   : > { %2316 = vrcp.f32 %v1747_v30  ;;  %v1754_v60 = vadd.f32 1.0, %v2313_v52 }
 0x719   : > { %2318 = vrcp.f32 %v1754_v60 }
 0x722   : > { %v2315_v53 = vpop.eup %2314 }
 0x723   : > { %v1758_v58 = vmul.f32 %v2315_v53, %v2311_v24 }
 0x724   : > { %v2317_v59 = vpop.eup %2316 }
 0x725   : > { %v1757_v63 = vmul.f32 %v2317_v59, %v3312_v7 }
 0x726   : > { %v2319_v47 = vpop.eup %2318 }
 0x727   : > { %v1759_v0 = vadd.f32 %v1758_v58, %v1757_v63 }
 0x729   : > { %2320 = vtanh.f32 %v1759_v0  ;;  %v1771_v2 = vsel %vm1769_vm14, %v1759_v0, %v3312_v7 }
 0x736   : > { %v2321_v48 = vpop.eup %2320 }
 0x737   : > { %v1761_v49 = vmul.f32 %v2321_v48, %v2319_v47 }
 0x739   : > { %v1770_v54 = vsel %vm1769_vm14, %v1761_v49, %v3315_v44 }
 0x73a   : > { %v1777_v23 = vpack.c.bf16 %v1770_v54, %v1770_v54 }
 0x73c   : > { %1811 = vmatmul.mubr.bf16.vlgmr.msra.gmra.mxu0 %v1777_v23  ;;  %1852 = vmatmul.mubr.bf16.vlgmr.msra.gmra.mxu1 %v1777_v23 }
 0x7fc   : > { %v1812_v3 = vpop.f32.mrf.mxu0  ;;  %v1853_v50 = vpop.f32.mrf.mxu1 }
 0x7fd   : > { %v1860_v51 = vadd.f32 %v1812_v3, %v3423_v34  ;;  %v1862_v4 = vadd.f32 %v1853_v50, %v3424_v56 }
 0x7fe   : > { %v1814_v45 = vpop.f32.mrf.mxu0  ;;  %v1855_v35 = vpop.f32.mrf.mxu1 }
 0x7ff   : > { %v2076_v36 = vmul.f32 -1.442695, %v1860_v51  ;;  %v1861_v62 = vadd.f32 %v1814_v45, %v2895_v17  ;;  %v1863_v11 = vadd.f32 %v1855_v35, %v2898_v20 }
 0x800   : > { %v1816_v21 = vpop.f32.mrf.mxu0  ;;  %v1857_v27 = vpop.f32.mrf.mxu1 }
 0x801   : > { %2322 = vpow2.f32 %v2076_v36  ;;  %v2077_v22 = vmul.f32 -1.442695, %v1861_v62  ;;  %v2078_v8 = vmul.f32 -1.442695, %v1863_v11 }
 0x802   : > { %v1817_v18 = vpop.f32.mrf.mxu0  ;;  %v1858_v6 = vpop.f32.mrf.mxu1 }
 0x803   : > { %2324 = vpow2.f32 %v2077_v22 }
 0x804   : > { %2326 = vtanh.f32 %v1862_v4 }
 0x805   : > { %2328 = vpow2.f32 %v2078_v8 }
 0x80e   : > { %v2323_v9 = vpop.eup %2322 }
 0x80f   : > { %v1867_v7 = vadd.f32 1.0, %v2323_v9 }
 0x810   : > { %v2325_v10 = vpop.eup %2324 }
 0x811   : > { %2330 = vrcp.f32 %v1867_v7  ;;  %v1873_v12 = vadd.f32 1.0, %v2325_v10  ;;  %v2327_v17 = vpop.eup %2326 }
 0x812   : > { %v2329_v13 = vpop.eup %2328 }
 0x813   : > { %2332 = vrcp.f32 %v1873_v12  ;;  %v1880_v57 = vadd.f32 1.0, %v2329_v13 }
 0x815   : > { %2334 = vrcp.f32 %v1880_v57 }
 0x81e   : > { %v2331_v44 = vpop.eup %2330 }
 0x81f   : > { %v1884_v46 = vmul.f32 %v2331_v44, %v2327_v17 }
 0x820   : > { %v2333_v16 = vpop.eup %2332 }
 0x821   : > { %v1883_v5 = vmul.f32 %v2333_v16, %v1771_v2 }
 0x822   : > { %v2335_v28 = vpop.eup %2334 }
 0x823   : > { %v1885_v20 = vadd.f32 %v1884_v46, %v1883_v5 }
 0x825   : > { %2336 = vtanh.f32 %v1885_v20  ;;  %v1897_v14 = vsel %vm1895_vm15, %v1885_v20, %v1771_v2 }
 0x826   : > { %1899 = vst [vmem:[#allocation4] sm:$0xff] %v1897_v14 }
 0x832   : > { %v2337_v37 = vpop.eup %2336 }
 0x833   : > { %v1887_v38 = vmul.f32 %v2337_v37, %v2335_v28 }
 0x835   : > { %v1896_v39 = vsel %vm1895_vm15, %v1887_v38, %v1770_v54 }
 0x836   : > { %1898 = vst [vmem:[#allocation3] sm:$0xff] %v1896_v39  ;;  %1900 = vst [vmem:[%s3379_s5] sm:$0xff] %v1896_v39 }
 0x837 PF: > { %s15_s20 = sadd.s32 1, %s2392_s20   ;;  %s3425_s18 = smov %s2388_s19 }
 0x838   : > { %p12_p6 = scmp.ge.s32.totalorder %s15_s20, 4   ;;  %s3426_s19 = smov %s3428_s21 }
 0x83a   :  { %14 = sbr.rel (!%p12_p6) target bundleno = 2 (0x2), region = 84 }

</bundles_post_ra>
